<compile_context>
chip_gen: v6e
topology: v6e:2x2x1
jax: 0.10.0
libtpu: 0.0.40
codegen_flags: <defaults>
</compile_context>

<pallas_src>
import functools

import numpy as np
import jax
import jax.numpy as jnp
from jax.experimental import pallas as pl
from jax.experimental.pallas import tpu as pltpu


def _block_kernel(x_ref, w_ref, mask_ref, bias_ref, gmat_ref, gamma_ref,
                  beta_ref, scale_ref, shift_ref, out_ref, *, eps, offsets):
    # Per grid step (= one batch element):
    #   x_ref    : (1, C_in, N)    N = T*H*W, lane-dense
    #   w_ref    : (9, C_out, C_in)  tap weights, tap = dh*3 + dw
    #   mask_ref : (9, 1, N)       per-tap boundary masks (0/1)
    #   bias/gamma/beta : (C_out, 1)
    #   gmat_ref : (C_out, C_out)  group membership / (group_size * N)
    #   scale/shift : (1, C_out, 1)
    #   out_ref  : (1, C_out, N)
    x = x_ref[0]                                         # (C_in, N)
    n_lanes = x.shape[1]
    n_elems = float(n_lanes)

    # --- Conv3d (1,3,3): in-VMEM im2col via lane rolls, 9 MXU matmuls -------
    y = None
    for tap, off in enumerate(offsets):
        xs = x if off == 0 else pltpu.roll(x, (-off) % n_lanes, axis=1)
        xs = xs * mask_ref[tap]                          # zero padded taps
        contrib = jnp.dot(w_ref[tap], xs, preferred_element_type=jnp.float32)
        y = contrib if y is None else y + contrib        # (C_out, N)

    # --- GroupNorm stats: lane-reduce first, then tiny group matmul ---------
    bias = bias_ref[...]                                 # (C_out, 1)
    s1 = jnp.sum(y, axis=1, keepdims=True)               # (C_out, 1)
    s2 = jnp.sum(y * y, axis=1, keepdims=True)           # (C_out, 1)
    # Fold the conv bias into the statistics (z = y + bias):
    z1 = s1 + n_elems * bias
    z2 = s2 + 2.0 * bias * s1 + n_elems * bias * bias
    mean = jnp.dot(gmat_ref[...], z1, preferred_element_type=jnp.float32)
    ex2 = jnp.dot(gmat_ref[...], z2, preferred_element_type=jnp.float32)
    # E[x^2]-mean^2 in f32; clamp tiny negative values from cancellation.
    var = jnp.maximum(ex2 - mean * mean, 0.0)
    rstd = jax.lax.rsqrt(var + eps)

    # --- bias + normalize + gamma/beta + scale_shift as ONE per-channel FMA -
    scale1 = scale_ref[0] + 1.0                          # (C_out, 1)
    g = rstd * gamma_ref[...] * scale1
    aff_b = (bias - mean) * g + beta_ref[...] * scale1 + shift_ref[0]
    t = y * g + aff_b                                    # (C_out, N)

    # --- SiLU: t * sigmoid(t); divide -> EUP approx reciprocal --------------
    out_ref[0] = t * pl.reciprocal(1.0 + jnp.exp(-t), approx=True)


def block_forward(x, conv_w, conv_b, gn_w, gn_b, scale_shift=None, *,
                  groups=8, eps=1e-5):
    """Fused Block forward.

    x: (B, C_in, T, H, W) f32;  conv_w: (C_out, C_in, 1, 3, 3);  conv_b: (C_out,)
    gn_w / gn_b: (C_out,);  scale_shift: optional ((B,C_out,1,1,1), (B,C_out,1,1,1))
    Returns (B, C_out, T, H, W) f32.
    """
    B, C_in, T, H, W = x.shape
    C_out = conv_w.shape[0]
    N = T * H * W
    cg = C_out // groups

    # Lane-dense (C, T*H*W) view of x; the reshape is contiguous (free).
    x2 = x.reshape(B, C_in, N).astype(jnp.float32)

    # Tap weights (9, C_out, C_in), tap index = dh*3 + dw.
    wtap = jnp.transpose(conv_w[:, :, 0].astype(jnp.float32),
                         (2, 3, 0, 1)).reshape(9, C_out, C_in)

    # Trace-time constants: per-tap flat lane offsets and boundary masks.
    offsets = tuple((dh - 1) * W + (dw - 1)
                    for dh in range(3) for dw in range(3))
    hh = np.arange(H)
    ww = np.arange(W)
    masks_np = np.empty((9, 1, N), np.float32)
    for tap in range(9):
        dh, dw = divmod(tap, 3)
        mh = ((hh + dh - 1 >= 0) & (hh + dh - 1 < H)).astype(np.float32)
        mw = ((ww + dw - 1 >= 0) & (ww + dw - 1 < W)).astype(np.float32)
        m2d = mh[:, None] * mw[None, :]                     # (H, W)
        masks_np[tap, 0] = np.broadcast_to(m2d[None], (T, H, W)).reshape(N)
    masks = jnp.asarray(masks_np)

    gid = np.arange(C_out) // cg
    gmat = jnp.asarray((gid[:, None] == gid[None, :]).astype(np.float32)
                       / float(cg * N))

    if scale_shift is None:
        scale = jnp.zeros((B, C_out, 1), jnp.float32)
        shift = jnp.zeros((B, C_out, 1), jnp.float32)
    else:
        s, t = scale_shift
        scale = s.reshape(B, C_out, 1).astype(jnp.float32)
        shift = t.reshape(B, C_out, 1).astype(jnp.float32)

    bias = conv_b.reshape(C_out, 1).astype(jnp.float32)
    gamma = gn_w.reshape(C_out, 1).astype(jnp.float32)
    beta = gn_b.reshape(C_out, 1).astype(jnp.float32)

    kernel = functools.partial(_block_kernel, eps=float(eps), offsets=offsets)
    out = pl.pallas_call(
        kernel,
        out_shape=jax.ShapeDtypeStruct((B, C_out, N), jnp.float32),
        grid=(B,),
        in_specs=[
            pl.BlockSpec((1, C_in, N), lambda b: (b, 0, 0)),      # x (per batch)
            pl.BlockSpec((9, C_out, C_in), lambda b: (0, 0, 0)),  # tap weights
            pl.BlockSpec((9, 1, N), lambda b: (0, 0, 0)),         # tap masks
            pl.BlockSpec((C_out, 1), lambda b: (0, 0)),           # conv bias
            pl.BlockSpec((C_out, C_out), lambda b: (0, 0)),       # group matrix
            pl.BlockSpec((C_out, 1), lambda b: (0, 0)),           # gn gamma
            pl.BlockSpec((C_out, 1), lambda b: (0, 0)),           # gn beta
            pl.BlockSpec((1, C_out, 1), lambda b: (b, 0, 0)),     # scale
            pl.BlockSpec((1, C_out, 1), lambda b: (b, 0, 0)),     # shift
        ],
        out_specs=pl.BlockSpec((1, C_out, N), lambda b: (b, 0, 0)),
        compiler_params=pltpu.CompilerParams(
            dimension_semantics=("parallel",)),
    )(x2, wtap, masks, bias, gmat, gamma, beta, scale, shift)

    # Free/contiguous reshape back to PyTorch NCDHW layout.
    return out.reshape(B, C_out, T, H, W)


def _reference(x, conv_w, conv_b, gn_w, gn_b, scale_shift, groups, eps=1e-5):
    """Pure-JAX reference mirroring the PyTorch Block.forward."""
    y = jax.lax.conv_general_dilated(
        x, conv_w, window_strides=(1, 1, 1),
        padding=((0, 0), (1, 1), (1, 1)),
        dimension_numbers=("NCDHW", "OIDHW", "NCDHW"),
        precision=jax.lax.Precision.HIGHEST)
    y = y + conv_b[None, :, None, None, None]
    B, C, T, H, W = y.shape
    cg = C // groups
    yg = y.reshape(B, groups, cg, T, H, W)
    mean = yg.mean(axis=(2, 3, 4, 5), keepdims=True)
    var = yg.var(axis=(2, 3, 4, 5), keepdims=True)
    yn = ((yg - mean) / jnp.sqrt(var + eps)).reshape(B, C, T, H, W)
    yn = yn * gn_w[None, :, None, None, None] + gn_b[None, :, None, None, None]
    if scale_shift is not None:
        s, t = scale_shift
        yn = yn * (s + 1.0) + t
    return yn * jax.nn.sigmoid(yn)


if __name__ == "__main__":
    key = jax.random.PRNGKey(0)
    B, C_in, C_out, T, H, W, groups = 2, 8, 16, 4, 16, 16, 8
    ks = jax.random.split(key, 7)
    x = jax.random.normal(ks[0], (B, C_in, T, H, W), jnp.float32)
    conv_w = 0.2 * jax.random.normal(ks[1], (C_out, C_in, 1, 3, 3), jnp.float32)
    conv_b = 0.1 * jax.random.normal(ks[2], (C_out,), jnp.float32)
    gn_w = 1.0 + 0.3 * jax.random.normal(ks[3], (C_out,), jnp.float32)
    gn_b = 0.1 * jax.random.normal(ks[4], (C_out,), jnp.float32)
    scale = 0.3 * jax.random.normal(ks[5], (B, C_out, 1, 1, 1), jnp.float32)
    shift = 0.3 * jax.random.normal(ks[6], (B, C_out, 1, 1, 1), jnp.float32)

    fwd = jax.jit(block_forward, static_argnames=("groups", "eps"))

    # with scale_shift
    out = jax.block_until_ready(
        fwd(x, conv_w, conv_b, gn_w, gn_b, (scale, shift), groups=groups))
    ref = _reference(x, conv_w, conv_b, gn_w, gn_b, (scale, shift), groups)
    assert out.shape == (B, C_out, T, H, W), out.shape
    # tolerance covers MXU accumulation order + approx reciprocal in SiLU
    assert jnp.allclose(out, ref, atol=5e-3, rtol=5e-3), \
        float(jnp.max(jnp.abs(out - ref)))

    # without scale_shift
    out0 = jax.block_until_ready(
        fwd(x, conv_w, conv_b, gn_w, gn_b, None, groups=groups))
    ref0 = _reference(x, conv_w, conv_b, gn_w, gn_b, None, groups)
    assert jnp.allclose(out0, ref0, atol=5e-3, rtol=5e-3), \
        float(jnp.max(jnp.abs(out0 - ref0)))

    print("KERNEL_OK")
</pallas_src>

<mosaic_0001>
module attributes {stable_mosaic.version = 11 : i64} {
  func.func @_block_kernel(%arg0: i32, %arg1: memref<1x8x1024xf32, #tpu.memory_space<vmem>>, %arg2: memref<9x16x8xf32, #tpu.memory_space<vmem>>, %arg3: memref<9x1x1024xf32, #tpu.memory_space<vmem>>, %arg4: memref<16x1xf32, #tpu.memory_space<vmem>>, %arg5: memref<16x16xf32, #tpu.memory_space<vmem>>, %arg6: memref<16x1xf32, #tpu.memory_space<vmem>>, %arg7: memref<16x1xf32, #tpu.memory_space<vmem>>, %arg8: memref<1x16x1xf32, #tpu.memory_space<vmem>>, %arg9: memref<1x16x1xf32, #tpu.memory_space<vmem>>, %arg10: memref<1x16x1024xf32, #tpu.memory_space<vmem>>) attributes {dimension_semantics = [#tpu.dimension_semantics<parallel>], iteration_bounds = array<i64: 2>, scalar_prefetch = 0 : i64, scratch_operands = 0 : i64, tpu.core_type = #tpu.core_type<tc>, window_params = [{transform_indices = @transform_0, window_bounds = array<i64: 1, 8, 1024>}, {pipeline_mode = #tpu.pipeline_mode<synchronous>, transform_indices = @transform_1, window_bounds = array<i64: 9, 16, 8>}, {pipeline_mode = #tpu.pipeline_mode<synchronous>, transform_indices = @transform_2, window_bounds = array<i64: 9, 1, 1024>}, {pipeline_mode = #tpu.pipeline_mode<synchronous>, transform_indices = @transform_3, window_bounds = array<i64: 16, 1>}, {pipeline_mode = #tpu.pipeline_mode<synchronous>, transform_indices = @transform_4, window_bounds = array<i64: 16, 16>}, {pipeline_mode = #tpu.pipeline_mode<synchronous>, transform_indices = @transform_5, window_bounds = array<i64: 16, 1>}, {pipeline_mode = #tpu.pipeline_mode<synchronous>, transform_indices = @transform_6, window_bounds = array<i64: 16, 1>}, {transform_indices = @transform_7, window_bounds = array<i64: 1, 16, 1>}, {transform_indices = @transform_8, window_bounds = array<i64: 1, 16, 1>}, {transform_indices = @transform_9, window_bounds = array<i64: 1, 16, 1024>}]} {
    %c0 = arith.constant 0 : index
    %c0_0 = arith.constant 0 : index
    %c0_1 = arith.constant 0 : index
    %0 = vector.load %arg1[%c0, %c0_0, %c0_1] : memref<1x8x1024xf32, #tpu.memory_space<vmem>>, vector<1x8x1024xf32>
    %1 = vector.shape_cast %0 : vector<1x8x1024xf32> to vector<8x1024xf32>
    %c17_i32 = arith.constant 17 : i32
    %2 = tpu.dynamic_rotate %1 by %c17_i32 dim 1 : vector<8x1024xf32>, i32 -> vector<8x1024xf32>
    %c0_2 = arith.constant 0 : index
    %c0_3 = arith.constant 0 : index
    %c0_4 = arith.constant 0 : index
    %3 = vector.load %arg3[%c0_2, %c0_3, %c0_4] : memref<9x1x1024xf32, #tpu.memory_space<vmem>>, vector<1x1x1024xf32>
    %4 = vector.shape_cast %3 : vector<1x1x1024xf32> to vector<1x1024xf32>
    %5 = vector.broadcast %4 : vector<1x1024xf32> to vector<8x1024xf32>
    %6 = arith.mulf %2, %5 : vector<8x1024xf32>
    %c0_5 = arith.constant 0 : index
    %c0_6 = arith.constant 0 : index
    %c0_7 = arith.constant 0 : index
    %7 = vector.load %arg2[%c0_5, %c0_6, %c0_7] : memref<9x16x8xf32, #tpu.memory_space<vmem>>, vector<1x16x8xf32>
    %8 = vector.shape_cast %7 : vector<1x16x8xf32> to vector<16x8xf32>
    %cst = arith.constant dense<0.000000e+00> : vector<16x1024xf32>
    %9 = tpu.matmul %8, %6, %cst {dimension_numbers = #tpu.dot_dimension_numbers<[1], [0], [0], [1], [0, 0, 1, 1], [], []>} : vector<16x8xf32>, vector<8x1024xf32>, vector<16x1024xf32> -> vector<16x1024xf32>
    %c16_i32 = arith.constant 16 : i32
    %10 = tpu.dynamic_rotate %1 by %c16_i32 dim 1 : vector<8x1024xf32>, i32 -> vector<8x1024xf32>
    %c1 = arith.constant 1 : index
    %c0_8 = arith.constant 0 : index
    %c0_9 = arith.constant 0 : index
    %11 = vector.load %arg3[%c1, %c0_8, %c0_9] : memref<9x1x1024xf32, #tpu.memory_space<vmem>>, vector<1x1x1024xf32>
    %12 = vector.shape_cast %11 : vector<1x1x1024xf32> to vector<1x1024xf32>
    %13 = vector.broadcast %12 : vector<1x1024xf32> to vector<8x1024xf32>
    %14 = arith.mulf %10, %13 : vector<8x1024xf32>
    %c1_10 = arith.constant 1 : index
    %c0_11 = arith.constant 0 : index
    %c0_12 = arith.constant 0 : index
    %15 = vector.load %arg2[%c1_10, %c0_11, %c0_12] : memref<9x16x8xf32, #tpu.memory_space<vmem>>, vector<1x16x8xf32>
    %16 = vector.shape_cast %15 : vector<1x16x8xf32> to vector<16x8xf32>
    %cst_13 = arith.constant dense<0.000000e+00> : vector<16x1024xf32>
    %17 = tpu.matmul %16, %14, %cst_13 {dimension_numbers = #tpu.dot_dimension_numbers<[1], [0], [0], [1], [0, 0, 1, 1], [], []>} : vector<16x8xf32>, vector<8x1024xf32>, vector<16x1024xf32> -> vector<16x1024xf32>
    %18 = arith.addf %9, %17 : vector<16x1024xf32>
    %c15_i32 = arith.constant 15 : i32
    %19 = tpu.dynamic_rotate %1 by %c15_i32 dim 1 : vector<8x1024xf32>, i32 -> vector<8x1024xf32>
    %c2 = arith.constant 2 : index
    %c0_14 = arith.constant 0 : index
    %c0_15 = arith.constant 0 : index
    %20 = vector.load %arg3[%c2, %c0_14, %c0_15] : memref<9x1x1024xf32, #tpu.memory_space<vmem>>, vector<1x1x1024xf32>
    %21 = vector.shape_cast %20 : vector<1x1x1024xf32> to vector<1x1024xf32>
    %22 = vector.broadcast %21 : vector<1x1024xf32> to vector<8x1024xf32>
    %23 = arith.mulf %19, %22 : vector<8x1024xf32>
    %c2_16 = arith.constant 2 : index
    %c0_17 = arith.constant 0 : index
    %c0_18 = arith.constant 0 : index
    %24 = vector.load %arg2[%c2_16, %c0_17, %c0_18] : memref<9x16x8xf32, #tpu.memory_space<vmem>>, vector<1x16x8xf32>
    %25 = vector.shape_cast %24 : vector<1x16x8xf32> to vector<16x8xf32>
    %cst_19 = arith.constant dense<0.000000e+00> : vector<16x1024xf32>
    %26 = tpu.matmul %25, %23, %cst_19 {dimension_numbers = #tpu.dot_dimension_numbers<[1], [0], [0], [1], [0, 0, 1, 1], [], []>} : vector<16x8xf32>, vector<8x1024xf32>, vector<16x1024xf32> -> vector<16x1024xf32>
    %27 = arith.addf %18, %26 : vector<16x1024xf32>
    %c1_i32 = arith.constant 1 : i32
    %28 = tpu.dynamic_rotate %1 by %c1_i32 dim 1 : vector<8x1024xf32>, i32 -> vector<8x1024xf32>
    %c3 = arith.constant 3 : index
    %c0_20 = arith.constant 0 : index
    %c0_21 = arith.constant 0 : index
    %29 = vector.load %arg3[%c3, %c0_20, %c0_21] : memref<9x1x1024xf32, #tpu.memory_space<vmem>>, vector<1x1x1024xf32>
    %30 = vector.shape_cast %29 : vector<1x1x1024xf32> to vector<1x1024xf32>
    %31 = vector.broadcast %30 : vector<1x1024xf32> to vector<8x1024xf32>
    %32 = arith.mulf %28, %31 : vector<8x1024xf32>
    %c3_22 = arith.constant 3 : index
    %c0_23 = arith.constant 0 : index
    %c0_24 = arith.constant 0 : index
    %33 = vector.load %arg2[%c3_22, %c0_23, %c0_24] : memref<9x16x8xf32, #tpu.memory_space<vmem>>, vector<1x16x8xf32>
    %34 = vector.shape_cast %33 : vector<1x16x8xf32> to vector<16x8xf32>
    %cst_25 = arith.constant dense<0.000000e+00> : vector<16x1024xf32>
    %35 = tpu.matmul %34, %32, %cst_25 {dimension_numbers = #tpu.dot_dimension_numbers<[1], [0], [0], [1], [0, 0, 1, 1], [], []>} : vector<16x8xf32>, vector<8x1024xf32>, vector<16x1024xf32> -> vector<16x1024xf32>
    %36 = arith.addf %27, %35 : vector<16x1024xf32>
    %c4 = arith.constant 4 : index
    %c0_26 = arith.constant 0 : index
    %c0_27 = arith.constant 0 : index
    %37 = vector.load %arg3[%c4, %c0_26, %c0_27] : memref<9x1x1024xf32, #tpu.memory_space<vmem>>, vector<1x1x1024xf32>
    %38 = vector.shape_cast %37 : vector<1x1x1024xf32> to vector<1x1024xf32>
    %39 = vector.broadcast %38 : vector<1x1024xf32> to vector<8x1024xf32>
    %40 = arith.mulf %1, %39 : vector<8x1024xf32>
    %c4_28 = arith.constant 4 : index
    %c0_29 = arith.constant 0 : index
    %c0_30 = arith.constant 0 : index
    %41 = vector.load %arg2[%c4_28, %c0_29, %c0_30] : memref<9x16x8xf32, #tpu.memory_space<vmem>>, vector<1x16x8xf32>
    %42 = vector.shape_cast %41 : vector<1x16x8xf32> to vector<16x8xf32>
    %cst_31 = arith.constant dense<0.000000e+00> : vector<16x1024xf32>
    %43 = tpu.matmul %42, %40, %cst_31 {dimension_numbers = #tpu.dot_dimension_numbers<[1], [0], [0], [1], [0, 0, 1, 1], [], []>} : vector<16x8xf32>, vector<8x1024xf32>, vector<16x1024xf32> -> vector<16x1024xf32>
    %44 = arith.addf %36, %43 : vector<16x1024xf32>
    %c1023_i32 = arith.constant 1023 : i32
    %45 = tpu.dynamic_rotate %1 by %c1023_i32 dim 1 : vector<8x1024xf32>, i32 -> vector<8x1024xf32>
    %c5 = arith.constant 5 : index
    %c0_32 = arith.constant 0 : index
    %c0_33 = arith.constant 0 : index
    %46 = vector.load %arg3[%c5, %c0_32, %c0_33] : memref<9x1x1024xf32, #tpu.memory_space<vmem>>, vector<1x1x1024xf32>
    %47 = vector.shape_cast %46 : vector<1x1x1024xf32> to vector<1x1024xf32>
    %48 = vector.broadcast %47 : vector<1x1024xf32> to vector<8x1024xf32>
    %49 = arith.mulf %45, %48 : vector<8x1024xf32>
    %c5_34 = arith.constant 5 : index
    %c0_35 = arith.constant 0 : index
    %c0_36 = arith.constant 0 : index
    %50 = vector.load %arg2[%c5_34, %c0_35, %c0_36] : memref<9x16x8xf32, #tpu.memory_space<vmem>>, vector<1x16x8xf32>
    %51 = vector.shape_cast %50 : vector<1x16x8xf32> to vector<16x8xf32>
    %cst_37 = arith.constant dense<0.000000e+00> : vector<16x1024xf32>
    %52 = tpu.matmul %51, %49, %cst_37 {dimension_numbers = #tpu.dot_dimension_numbers<[1], [0], [0], [1], [0, 0, 1, 1], [], []>} : vector<16x8xf32>, vector<8x1024xf32>, vector<16x1024xf32> -> vector<16x1024xf32>
    %53 = arith.addf %44, %52 : vector<16x1024xf32>
    %c1009_i32 = arith.constant 1009 : i32
    %54 = tpu.dynamic_rotate %1 by %c1009_i32 dim 1 : vector<8x1024xf32>, i32 -> vector<8x1024xf32>
    %c6 = arith.constant 6 : index
    %c0_38 = arith.constant 0 : index
    %c0_39 = arith.constant 0 : index
    %55 = vector.load %arg3[%c6, %c0_38, %c0_39] : memref<9x1x1024xf32, #tpu.memory_space<vmem>>, vector<1x1x1024xf32>
    %56 = vector.shape_cast %55 : vector<1x1x1024xf32> to vector<1x1024xf32>
    %57 = vector.broadcast %56 : vector<1x1024xf32> to vector<8x1024xf32>
    %58 = arith.mulf %54, %57 : vector<8x1024xf32>
    %c6_40 = arith.constant 6 : index
    %c0_41 = arith.constant 0 : index
    %c0_42 = arith.constant 0 : index
    %59 = vector.load %arg2[%c6_40, %c0_41, %c0_42] : memref<9x16x8xf32, #tpu.memory_space<vmem>>, vector<1x16x8xf32>
    %60 = vector.shape_cast %59 : vector<1x16x8xf32> to vector<16x8xf32>
    %cst_43 = arith.constant dense<0.000000e+00> : vector<16x1024xf32>
    %61 = tpu.matmul %60, %58, %cst_43 {dimension_numbers = #tpu.dot_dimension_numbers<[1], [0], [0], [1], [0, 0, 1, 1], [], []>} : vector<16x8xf32>, vector<8x1024xf32>, vector<16x1024xf32> -> vector<16x1024xf32>
    %62 = arith.addf %53, %61 : vector<16x1024xf32>
    %c1008_i32 = arith.constant 1008 : i32
    %63 = tpu.dynamic_rotate %1 by %c1008_i32 dim 1 : vector<8x1024xf32>, i32 -> vector<8x1024xf32>
    %c7 = arith.constant 7 : index
    %c0_44 = arith.constant 0 : index
    %c0_45 = arith.constant 0 : index
    %64 = vector.load %arg3[%c7, %c0_44, %c0_45] : memref<9x1x1024xf32, #tpu.memory_space<vmem>>, vector<1x1x1024xf32>
    %65 = vector.shape_cast %64 : vector<1x1x1024xf32> to vector<1x1024xf32>
    %66 = vector.broadcast %65 : vector<1x1024xf32> to vector<8x1024xf32>
    %67 = arith.mulf %63, %66 : vector<8x1024xf32>
    %c7_46 = arith.constant 7 : index
    %c0_47 = arith.constant 0 : index
    %c0_48 = arith.constant 0 : index
    %68 = vector.load %arg2[%c7_46, %c0_47, %c0_48] : memref<9x16x8xf32, #tpu.memory_space<vmem>>, vector<1x16x8xf32>
    %69 = vector.shape_cast %68 : vector<1x16x8xf32> to vector<16x8xf32>
    %cst_49 = arith.constant dense<0.000000e+00> : vector<16x1024xf32>
    %70 = tpu.matmul %69, %67, %cst_49 {dimension_numbers = #tpu.dot_dimension_numbers<[1], [0], [0], [1], [0, 0, 1, 1], [], []>} : vector<16x8xf32>, vector<8x1024xf32>, vector<16x1024xf32> -> vector<16x1024xf32>
    %71 = arith.addf %62, %70 : vector<16x1024xf32>
    %c1007_i32 = arith.constant 1007 : i32
    %72 = tpu.dynamic_rotate %1 by %c1007_i32 dim 1 : vector<8x1024xf32>, i32 -> vector<8x1024xf32>
    %c8 = arith.constant 8 : index
    %c0_50 = arith.constant 0 : index
    %c0_51 = arith.constant 0 : index
    %73 = vector.load %arg3[%c8, %c0_50, %c0_51] : memref<9x1x1024xf32, #tpu.memory_space<vmem>>, vector<1x1x1024xf32>
    %74 = vector.shape_cast %73 : vector<1x1x1024xf32> to vector<1x1024xf32>
    %75 = vector.broadcast %74 : vector<1x1024xf32> to vector<8x1024xf32>
    %76 = arith.mulf %72, %75 : vector<8x1024xf32>
    %c8_52 = arith.constant 8 : index
    %c0_53 = arith.constant 0 : index
    %c0_54 = arith.constant 0 : index
    %77 = vector.load %arg2[%c8_52, %c0_53, %c0_54] : memref<9x16x8xf32, #tpu.memory_space<vmem>>, vector<1x16x8xf32>
    %78 = vector.shape_cast %77 : vector<1x16x8xf32> to vector<16x8xf32>
    %cst_55 = arith.constant dense<0.000000e+00> : vector<16x1024xf32>
    %79 = tpu.matmul %78, %76, %cst_55 {dimension_numbers = #tpu.dot_dimension_numbers<[1], [0], [0], [1], [0, 0, 1, 1], [], []>} : vector<16x8xf32>, vector<8x1024xf32>, vector<16x1024xf32> -> vector<16x1024xf32>
    %80 = arith.addf %71, %79 : vector<16x1024xf32>
    %c0_56 = arith.constant 0 : index
    %c0_57 = arith.constant 0 : index
    %81 = vector.load %arg4[%c0_56, %c0_57] : memref<16x1xf32, #tpu.memory_space<vmem>>, vector<16x1xf32>
    %cst_58 = arith.constant dense<0.000000e+00> : vector<16xf32>
    %82 = vector.multi_reduction <add>, %80, %cst_58 [1] : vector<16x1024xf32> to vector<16xf32>
    %83 = vector.shape_cast %82 : vector<16xf32> to vector<16x1xf32>
    %84 = arith.mulf %80, %80 : vector<16x1024xf32>
    %cst_59 = arith.constant dense<0.000000e+00> : vector<16xf32>
    %85 = vector.multi_reduction <add>, %84, %cst_59 [1] : vector<16x1024xf32> to vector<16xf32>
    %86 = vector.shape_cast %85 : vector<16xf32> to vector<16x1xf32>
    %cst_60 = arith.constant 1.024000e+03 : f32
    %87 = vector.broadcast %cst_60 : f32 to vector<16x1xf32>
    %88 = arith.mulf %87, %81 : vector<16x1xf32>
    %89 = arith.addf %83, %88 : vector<16x1xf32>
    %cst_61 = arith.constant 2.000000e+00 : f32
    %90 = vector.broadcast %cst_61 : f32 to vector<16x1xf32>
    %91 = arith.mulf %90, %81 : vector<16x1xf32>
    %92 = arith.mulf %91, %83 : vector<16x1xf32>
    %93 = arith.addf %86, %92 : vector<16x1xf32>
    %cst_62 = arith.constant 1.024000e+03 : f32
    %94 = vector.broadcast %cst_62 : f32 to vector<16x1xf32>
    %95 = arith.mulf %94, %81 : vector<16x1xf32>
    %96 = arith.mulf %95, %81 : vector<16x1xf32>
    %97 = arith.addf %93, %96 : vector<16x1xf32>
    %c0_63 = arith.constant 0 : index
    %c0_64 = arith.constant 0 : index
    %98 = vector.load %arg5[%c0_63, %c0_64] : memref<16x16xf32, #tpu.memory_space<vmem>>, vector<16x16xf32>
    %cst_65 = arith.constant dense<0.000000e+00> : vector<16x1xf32>
    %99 = tpu.matmul %98, %89, %cst_65 {dimension_numbers = #tpu.dot_dimension_numbers<[1], [0], [0], [1], [0, 0, 1, 1], [], []>} : vector<16x16xf32>, vector<16x1xf32>, vector<16x1xf32> -> vector<16x1xf32>
    %c0_66 = arith.constant 0 : index
    %c0_67 = arith.constant 0 : index
    %100 = vector.load %arg5[%c0_66, %c0_67] : memref<16x16xf32, #tpu.memory_space<vmem>>, vector<16x16xf32>
    %cst_68 = arith.constant dense<0.000000e+00> : vector<16x1xf32>
    %101 = tpu.matmul %100, %97, %cst_68 {dimension_numbers = #tpu.dot_dimension_numbers<[1], [0], [0], [1], [0, 0, 1, 1], [], []>} : vector<16x16xf32>, vector<16x1xf32>, vector<16x1xf32> -> vector<16x1xf32>
    %102 = arith.mulf %99, %99 : vector<16x1xf32>
    %103 = arith.subf %101, %102 : vector<16x1xf32>
    %cst_69 = arith.constant 0.000000e+00 : f32
    %104 = vector.broadcast %cst_69 : f32 to vector<16x1xf32>
    %105 = arith.maximumf %103, %104 : vector<16x1xf32>
    %cst_70 = arith.constant 9.99999974E-6 : f32
    %106 = vector.broadcast %cst_70 : f32 to vector<16x1xf32>
    %107 = arith.addf %105, %106 : vector<16x1xf32>
    %108 = math.rsqrt %107 : vector<16x1xf32>
    %c0_71 = arith.constant 0 : index
    %c0_72 = arith.constant 0 : index
    %c0_73 = arith.constant 0 : index
    %109 = vector.load %arg8[%c0_71, %c0_72, %c0_73] : memref<1x16x1xf32, #tpu.memory_space<vmem>>, vector<1x16x1xf32>
    %110 = vector.shape_cast %109 : vector<1x16x1xf32> to vector<16x1xf32>
    %cst_74 = arith.constant 1.000000e+00 : f32
    %111 = vector.broadcast %cst_74 : f32 to vector<16x1xf32>
    %112 = arith.addf %110, %111 : vector<16x1xf32>
    %c0_75 = arith.constant 0 : index
    %c0_76 = arith.constant 0 : index
    %113 = vector.load %arg6[%c0_75, %c0_76] : memref<16x1xf32, #tpu.memory_space<vmem>>, vector<16x1xf32>
    %114 = arith.mulf %108, %113 : vector<16x1xf32>
    %115 = arith.mulf %114, %112 : vector<16x1xf32>
    %116 = arith.subf %81, %99 : vector<16x1xf32>
    %117 = arith.mulf %116, %115 : vector<16x1xf32>
    %c0_77 = arith.constant 0 : index
    %c0_78 = arith.constant 0 : index
    %118 = vector.load %arg7[%c0_77, %c0_78] : memref<16x1xf32, #tpu.memory_space<vmem>>, vector<16x1xf32>
    %119 = arith.mulf %118, %112 : vector<16x1xf32>
    %120 = arith.addf %117, %119 : vector<16x1xf32>
    %c0_79 = arith.constant 0 : index
    %c0_80 = arith.constant 0 : index
    %c0_81 = arith.constant 0 : index
    %121 = vector.load %arg9[%c0_79, %c0_80, %c0_81] : memref<1x16x1xf32, #tpu.memory_space<vmem>>, vector<1x16x1xf32>
    %122 = vector.shape_cast %121 : vector<1x16x1xf32> to vector<16x1xf32>
    %123 = arith.addf %120, %122 : vector<16x1xf32>
    %124 = vector.broadcast %115 : vector<16x1xf32> to vector<16x1024xf32>
    %125 = arith.mulf %80, %124 : vector<16x1024xf32>
    %126 = vector.broadcast %123 : vector<16x1xf32> to vector<16x1024xf32>
    %127 = arith.addf %125, %126 : vector<16x1024xf32>
    %cst_82 = arith.constant 0.000000e+00 : f32
    %128 = vector.broadcast %cst_82 : f32 to vector<16x1024xf32>
    %129 = arith.subf %128, %127 : vector<16x1024xf32>
    %130 = math.exp %129 : vector<16x1024xf32>
    %cst_83 = arith.constant 1.000000e+00 : f32
    %131 = vector.broadcast %cst_83 : f32 to vector<16x1024xf32>
    %132 = arith.addf %131, %130 : vector<16x1024xf32>
    %133 = tpu.reciprocal %132 {approx = true} : vector<16x1024xf32> -> vector<16x1024xf32>
    %134 = arith.mulf %127, %133 : vector<16x1024xf32>
    %c0_84 = arith.constant 0 : index
    %c0_85 = arith.constant 0 : index
    %c0_86 = arith.constant 0 : index
    %135 = vector.load %arg10[%c0_84, %c0_85, %c0_86] : memref<1x16x1024xf32, #tpu.memory_space<vmem>>, vector<1x16x1024xf32>
    %136 = vector.shape_cast %135 : vector<1x16x1024xf32> to vector<16x1024xf32>
    %137 = vector.shape_cast %134 : vector<16x1024xf32> to vector<1x16x1024xf32>
    tpu.vector_store %arg10[%c0_84, %c0_85, %c0_86], %137 {strides = array<i32>} : memref<1x16x1024xf32, #tpu.memory_space<vmem>>, vector<1x16x1024xf32>,
    return
  }
  func.func @transform_0(%arg0: i32) -> (i32, i32, i32) {
    %c0_i32 = arith.constant 0 : i32
    %c0_i32_0 = arith.constant 0 : i32
    %c0_i32_1 = arith.constant 0 : i32
    return %arg0, %c0_i32, %c0_i32_0 : i32, i32, i32
  }
  func.func @transform_1(%arg0: i32) -> (i32, i32, i32) {
    %c0_i32 = arith.constant 0 : i32
    %c0_i32_0 = arith.constant 0 : i32
    %c0_i32_1 = arith.constant 0 : i32
    %c0_i32_2 = arith.constant 0 : i32
    return %c0_i32, %c0_i32_0, %c0_i32_1 : i32, i32, i32
  }
  func.func @transform_2(%arg0: i32) -> (i32, i32, i32) {
    %c0_i32 = arith.constant 0 : i32
    %c0_i32_0 = arith.constant 0 : i32
    %c0_i32_1 = arith.constant 0 : i32
    %c0_i32_2 = arith.constant 0 : i32
    return %c0_i32, %c0_i32_0, %c0_i32_1 : i32, i32, i32
  }
  func.func @transform_3(%arg0: i32) -> (i32, i32) {
    %c0_i32 = arith.constant 0 : i32
    %c0_i32_0 = arith.constant 0 : i32
    %c0_i32_1 = arith.constant 0 : i32
    return %c0_i32, %c0_i32_0 : i32, i32
  }
  func.func @transform_4(%arg0: i32) -> (i32, i32) {
    %c0_i32 = arith.constant 0 : i32
    %c0_i32_0 = arith.constant 0 : i32
    %c0_i32_1 = arith.constant 0 : i32
    return %c0_i32, %c0_i32_0 : i32, i32
  }
  func.func @transform_5(%arg0: i32) -> (i32, i32) {
    %c0_i32 = arith.constant 0 : i32
    %c0_i32_0 = arith.constant 0 : i32
    %c0_i32_1 = arith.constant 0 : i32
    return %c0_i32, %c0_i32_0 : i32, i32
  }
  func.func @transform_6(%arg0: i32) -> (i32, i32) {
    %c0_i32 = arith.constant 0 : i32
    %c0_i32_0 = arith.constant 0 : i32
    %c0_i32_1 = arith.constant 0 : i32
    return %c0_i32, %c0_i32_0 : i32, i32
  }
  func.func @transform_7(%arg0: i32) -> (i32, i32, i32) {
    %c0_i32 = arith.constant 0 : i32
    %c0_i32_0 = arith.constant 0 : i32
    %c0_i32_1 = arith.constant 0 : i32
    return %arg0, %c0_i32, %c0_i32_0 : i32, i32, i32
  }
  func.func @transform_8(%arg0: i32) -> (i32, i32, i32) {
    %c0_i32 = arith.constant 0 : i32
    %c0_i32_0 = arith.constant 0 : i32
    %c0_i32_1 = arith.constant 0 : i32
    return %arg0, %c0_i32, %c0_i32_0 : i32, i32, i32
  }
  func.func @transform_9(%arg0: i32) -> (i32, i32, i32) {
    %c0_i32 = arith.constant 0 : i32
    %c0_i32_0 = arith.constant 0 : i32
    %c0_i32_1 = arith.constant 0 : i32
    return %arg0, %c0_i32, %c0_i32_0 : i32, i32, i32
  }
}

</mosaic_0001>

<bundles_post_ra>
// kernel: block_forward.1
= control target key start
LH: loop header
LB: loop body
LE: loop exit
PB: predicated region body
PF: predicated region fallthrough
CT: control target
= control target key end

     0   :  { %s4807_s30 = smov 0   ;;  %s5813_s0 = inlined_call_operand.vmem [shape: f32[2,8,1024], index: 0, kind: input, shape index: {}]   ;;  %s5814_s1 = inlined_call_operand.vmem [shape: f32[9,16,8], index: 1, kind: input, shape index: {}]   ;;  %s5815_s2 = inlined_call_operand.vmem [shape: f32[9,1,1024], index: 2, kind: input, shape index: {}]   ;;  %s5816_s3 = inlined_call_operand.vmem [shape: f32[16,1], index: 3, kind: input, shape index: {}]   ;;  %s5817_s4 = inlined_call_operand.vmem [shape: f32[16,16], index: 4, kind: input, shape index: {}]   ;;  %s5818_s5 = inlined_call_operand.vmem [shape: f32[16,1], index: 5, kind: input, shape index: {}]   ;;  %s5819_s6 = inlined_call_operand.vmem [shape: f32[16,1], index: 6, kind: input, shape index: {}]   ;;  %s5820_s7 = inlined_call_operand.vmem [shape: f32[2,16,1], index: 7, kind: input, shape index: {}]   ;;  %s5821_s8 = inlined_call_operand.vmem [shape: f32[2,16,1], index: 8, kind: input, shape index: {}]   ;;  %s5822_s9 = inlined_call_operand.vmem [shape: f32[2,16,1024], index: 9, kind: output, shape index: {}]  }
   0x1 LB: > { %s4510_s10 = sadd.s32 4294967295, %s4745_s30   ;;  %p4514_p0 = scmp.ge.s32.totalorder %s4745_s30, 1  ;;  %s4745_s30 = sphi %s4807_s30, %s19_s30  }
   0x2   : > { %p307_p1 = scmp.lt.s32.totalorder %s4745_s30, 3 }
   0x4   : > { %p308_p2 = pnand %p4514_p0, %p307_p1 }
   0x6   : > { %311 = sbr.rel (%p308_p2) target bundleno = 1039 (0x40f), region = 56 }
   0xb   : > { %p353_p3 = scmp.lt.s32.totalorder %s4510_s10, 1  ;;  %v4747_v0 = vmov 0.0   ;;  %s4748_s15 = smov 16   ;;  %v397_v9 = vlaneseq  ;;  %v4523_v16 = vld [vmem:[%s5815_s2 + $0x8] sm:$0xff]  ;;  %v4524_v32 = vld [vmem:[%s5814_s1 + $0x10] sm:$0xff]  ;;  %vm539_vm1 = vcmask 64512  }
   0xc   : > { %610 = vmatprep.mubr.f32.mxu0 %v4747_v0  ;;  %687 = vmatprep.mubr.f32.mxu1 %v4747_v0  ;;  %s4749_s16 = smov 17   ;;  %s4750_s17 = smov 15   ;;  %v4951_v42 = vld [vmem:[%s5815_s2] sm:$0xff]  ;;  %v4525_v45 = vld [vmem:[%s5814_s1 + $0x18] sm:$0xff]  ;;  %vm4076_vm9 = vcmask 130048  }
   0xd   : > { %s5856_s10 = smov (!%p353_p3, %s4510_s10), 1  ;;  %s4751_s18 = smov 1   ;;  %v411_v10 = vshrl.u32 %v397_v9, 7  ;;  %v4895_v11 = vand.u32 127, %v397_v9 }
   0xe   : > { %s4625_s11 = sshll.u32 %s5856_s10, 6  ;;  %s4752_s19 = smov 127  }
   0xf   : > { %s357_s14 = scalar_lea.vmem %s5813_s0, %s4625_s11  ;;  %s4753_s20 = smov 113   ;;  %v4901_v12 = vsub.s32 1, %v411_v10  ;;  %v4903_v13 = vsub.s32 0, %v411_v10  ;;  %vm476_vm0 = vcmp.lt.s32.totalorder %v4895_v11, 16  ;;  %v4914_v18 = vsub.s32 3, %v411_v10 }
  0x10   : > { %v4823_v1 = vld [vmem:[%s357_s14 + $0x38] sm:$0xff]  ;;  %v4825_v2 = vld [vmem:[%s357_s14] sm:$0xff]  ;;  %v4829_v3 = vld [vmem:[%s357_s14 + $0x10] sm:$0xff]  ;;  %s4754_s21 = smov 112   ;;  %s4755_s22 = smov 111   ;;  %v4917_v20 = vsub.s32 2, %v411_v10 }
  0x11   : > { %474 = vrot.lane.b32.xlu1 %v4823_v1, %s4748_s15  ;;  %460 = vrot.lane.b32.xlu0 %v4825_v2, %s4748_s15  ;;  %v4831_v4 = vld [vmem:[%s357_s14 + $0x8] sm:$0xff]  ;;  %v4835_v5 = vld [vmem:[%s357_s14 + $0x20] sm:$0xff]  ;;  %v495_v17 = vrot.slane %v4523_v16, %v4901_v12  ;;  %v491_v19 = vrot.slane %v4523_v16, %v4903_v13  ;;  %v4923_v25 = vsub.s32 7, %v411_v10  ;;  %v503_v27 = vrot.slane %v4523_v16, %v4914_v18  ;;  %s4626_s28 = sshll.u32 %s5856_s10, 4  ;;  %s4628_s24 = sshll.u32 %s5856_s10, 7 }
  0x12   : > { %v4837_v6 = vld [vmem:[%s357_s14 + $0x18] sm:$0xff]  ;;  %v4841_v7 = vld [vmem:[%s357_s14 + $0x30] sm:$0xff]  ;;  %v4843_v8 = vld [vmem:[%s357_s14 + $0x28] sm:$0xff]  ;;  %v4926_v28 = vsub.s32 5, %v411_v10  ;;  %v4928_v29 = vsub.s32 6, %v411_v10  ;;  %v4934_v30 = vsub.s32 4, %v411_v10  ;;  %v499_v33 = vrot.slane %v4523_v16, %v4917_v20  ;;  %s362_s12 = scalar_lea.vmem %s5820_s7, %s4626_s28  ;;  %s367_s23 = scalar_lea.vmem %s5821_s8, %s4626_s28 }
  0x13   : > { %v519_v37 = vrot.slane %v4523_v16, %v4923_v25  ;;  %v417_v52 = vrot.slane %v4951_v42, %v4901_v12  ;;  %vm399_vm2 = vcmp.lt.s32.totalorder %v4895_v11, 17  ;;  %v413_v61 = vrot.slane %v4951_v42, %v4903_v13  ;;  %s5776_s27 = scalar_lea.vmem %s5822_s9, %s4628_s24 }
  0x14   : > { %v511_v40 = vrot.slane %v4523_v16, %v4926_v28  ;;  %v515_v41 = vrot.slane %v4523_v16, %v4928_v29  ;;  %v507_v43 = vrot.slane %v4523_v16, %v4934_v30  ;;  %v458_v16 = vld [vmem:[%s5814_s1] sm:$0xff]  ;;  %vm1184_vm3 = vcmp.lt.s32.totalorder %v4895_v11, 15 }
  0x15   : > { %464 = vrot.lane.b32.xlu1 %v4829_v3, %s4748_s15  ;;  %462 = vrot.lane.b32.xlu0 %v4831_v4, %s4748_s15  ;;  %vm1593_vm4 = vcmp.lt.s32.totalorder %v4895_v11, 1  ;;  %vm2386_vm5 = vcmp.lt.s32.totalorder %v4895_v11, 127  ;;  %vm2795_vm6 = vcmp.lt.s32.totalorder %v4895_v11, 113  ;;  %vm3204_vm7 = vcmp.lt.s32.totalorder %v4895_v11, 112 }
  0x16   : > { %vm3613_vm8 = vcmp.lt.s32.totalorder %v4895_v11, 111 }
  0x19   : > { %468 = vrot.lane.b32.xlu1 %v4835_v5, %s4748_s15  ;;  %466 = vrot.lane.b32.xlu0 %v4837_v6, %s4748_s15 }
  0x1d   : > { %472 = vrot.lane.b32.xlu1 %v4841_v7, %s4748_s15  ;;  %470 = vrot.lane.b32.xlu0 %v4843_v8, %s4748_s15 }
  0x21   : > { %383 = vrot.lane.b32.xlu1 %v4831_v4, %s4749_s16  ;;  %381 = vrot.lane.b32.xlu0 %v4825_v2, %s4749_s16 }
  0x25   : > { %385 = vrot.lane.b32.xlu1 %v4829_v3, %s4749_s16  ;;  %395 = vrot.lane.b32.xlu0 %v4823_v1, %s4749_s16 }
  0x29   : > { %389 = vrot.lane.b32.xlu1 %v4835_v5, %s4749_s16  ;;  %387 = vrot.lane.b32.xlu0 %v4837_v6, %s4749_s16 }
  0x2d   : > { %393 = vrot.lane.b32.xlu1 %v4841_v7, %s4749_s16  ;;  %391 = vrot.lane.b32.xlu0 %v4843_v8, %s4749_s16 }
  0x31   : > { %1170 = vrot.lane.b32.xlu1 %v4831_v4, %s4750_s17  ;;  %1168 = vrot.lane.b32.xlu0 %v4825_v2, %s4750_s17 }
  0x35   : > { %1172 = vrot.lane.b32.xlu1 %v4829_v3, %s4750_s17  ;;  %1182 = vrot.lane.b32.xlu0 %v4823_v1, %s4750_s17 }
  0x39   : > { %1176 = vrot.lane.b32.xlu1 %v4835_v5, %s4750_s17  ;;  %1174 = vrot.lane.b32.xlu0 %v4837_v6, %s4750_s17 }
  0x3d   : > { %1180 = vrot.lane.b32.xlu1 %v4841_v7, %s4750_s17  ;;  %1178 = vrot.lane.b32.xlu0 %v4843_v8, %s4750_s17 }
  0x41   : > { %1579 = vrot.lane.b32.xlu1 %v4831_v4, %s4751_s18  ;;  %1577 = vrot.lane.b32.xlu0 %v4825_v2, %s4751_s18 }
  0x45   : > { %1581 = vrot.lane.b32.xlu1 %v4829_v3, %s4751_s18  ;;  %1591 = vrot.lane.b32.xlu0 %v4823_v1, %s4751_s18 }
  0x49   : > { %1585 = vrot.lane.b32.xlu1 %v4835_v5, %s4751_s18  ;;  %1583 = vrot.lane.b32.xlu0 %v4837_v6, %s4751_s18 }
  0x4d   : > { %1589 = vrot.lane.b32.xlu1 %v4841_v7, %s4751_s18  ;;  %1587 = vrot.lane.b32.xlu0 %v4843_v8, %s4751_s18 }
  0x51   : > { %2374 = vrot.lane.b32.xlu1 %v4829_v3, %s4752_s19  ;;  %2372 = vrot.lane.b32.xlu0 %v4831_v4, %s4752_s19 }
  0x55   : > { %2376 = vrot.lane.b32.xlu1 %v4837_v6, %s4752_s19  ;;  %2370 = vrot.lane.b32.xlu0 %v4825_v2, %s4752_s19 }
  0x59   : > { %2380 = vrot.lane.b32.xlu1 %v4843_v8, %s4752_s19  ;;  %2378 = vrot.lane.b32.xlu0 %v4835_v5, %s4752_s19 }
  0x5d   : > { %2384 = vrot.lane.b32.xlu1 %v4823_v1, %s4752_s19  ;;  %2382 = vrot.lane.b32.xlu0 %v4841_v7, %s4752_s19 }
  0x61   : > { %2783 = vrot.lane.b32.xlu1 %v4829_v3, %s4753_s20  ;;  %2781 = vrot.lane.b32.xlu0 %v4831_v4, %s4753_s20 }
  0x65   : > { %2785 = vrot.lane.b32.xlu1 %v4837_v6, %s4753_s20  ;;  %2779 = vrot.lane.b32.xlu0 %v4825_v2, %s4753_s20 }
  0x69   : > { %2789 = vrot.lane.b32.xlu1 %v4843_v8, %s4753_s20  ;;  %2787 = vrot.lane.b32.xlu0 %v4835_v5, %s4753_s20 }
  0x6d   : > { %2793 = vrot.lane.b32.xlu1 %v4823_v1, %s4753_s20  ;;  %2791 = vrot.lane.b32.xlu0 %v4841_v7, %s4753_s20 }
  0x71   : > { %3192 = vrot.lane.b32.xlu1 %v4829_v3, %s4754_s21  ;;  %3190 = vrot.lane.b32.xlu0 %v4831_v4, %s4754_s21 }
  0x75   : > { %3194 = vrot.lane.b32.xlu1 %v4837_v6, %s4754_s21  ;;  %3188 = vrot.lane.b32.xlu0 %v4825_v2, %s4754_s21 }
  0x79   : > { %3198 = vrot.lane.b32.xlu1 %v4843_v8, %s4754_s21  ;;  %3196 = vrot.lane.b32.xlu0 %v4835_v5, %s4754_s21 }
  0x7d   : > { %3202 = vrot.lane.b32.xlu1 %v4823_v1, %s4754_s21  ;;  %3200 = vrot.lane.b32.xlu0 %v4841_v7, %s4754_s21 }
  0x81   : > { %3601 = vrot.lane.b32.xlu1 %v4829_v3, %s4755_s22  ;;  %3599 = vrot.lane.b32.xlu0 %v4831_v4, %s4755_s22 }
  0x83   : > { %v475_v14 = vpop.permute.xlu1 %474  ;;  %v461_v15 = vpop.permute.xlu0 %460 }
  0x84   : > { %v484_v21 = vsel %vm476_vm0, %v475_v14, %v461_v15 }
  0x85   : > { %3603 = vrot.lane.b32.xlu1 %v4837_v6, %s4755_s22  ;;  %3597 = vrot.lane.b32.xlu0 %v4825_v2, %s4755_s22  ;;  %v528_v31 = vmul.f32 %v491_v19, %v484_v21 }
  0x87   : > { %v465_v22 = vpop.permute.xlu1 %464  ;;  %v463_v23 = vpop.permute.xlu0 %462 }
  0x88   : > { %v483_v24 = vsel %vm476_vm0, %v461_v15, %v463_v23  ;;  %v482_v34 = vsel %vm476_vm0, %v463_v23, %v465_v22  ;;  %v421_v15 = vrot.slane %v4951_v42, %v4917_v20  ;;  %v441_v23 = vrot.slane %v4951_v42, %v4923_v25 }
  0x89   : > { %v529_v26 = vmul.f32 %v495_v17, %v483_v24  ;;  %3607 = vrot.lane.b32.xlu1 %v4843_v8, %s4755_s22  ;;  %3605 = vrot.lane.b32.xlu0 %v4835_v5, %s4755_s22  ;;  %v530_v44 = vmul.f32 %v499_v33, %v482_v34  ;;  %v429_v33 = vrot.slane %v4951_v42, %v4934_v30  ;;  %v459_v34 = vld [vmem:[%s5814_s1 + $0x8] sm:$0xff] }
  0x8b   : > { %v469_v35 = vpop.permute.xlu1 %468  ;;  %576 = vmatprep.subr.mxu0 %v529_v26  ;;  %v467_v36 = vpop.permute.xlu0 %466  ;;  %v433_v26 = vrot.slane %v4951_v42, %v4926_v28 }
  0x8c   : > { %577 = vmatpush1.msra.mxu0 %v528_v31  ;;  %v481_v38 = vsel %vm476_vm0, %v465_v22, %v467_v36  ;;  %v480_v46 = vsel %vm476_vm0, %v467_v36, %v469_v35  ;;  %v5013_v31 = vld [vmem:[%s5815_s2 + $0x10] sm:$0xff] }
  0x8d   : > { %4526 = vmatmul.mubr.msk.f32.vlgmr.msra.gmra.mxu0 %vm539_vm1, %v4524_v32  ;;  %v531_v39 = vmul.f32 %v503_v27, %v481_v38  ;;  %3611 = vrot.lane.b32.xlu1 %v4823_v1, %s4755_s22  ;;  %v532_v56 = vmul.f32 %v507_v43, %v480_v46  ;;  %v437_v27 = vrot.slane %v4951_v42, %v4928_v29 }
  0x8e   : > { %616 = vmatprep.mubr.f32.mxu0 %v4747_v0  ;;  %3609 = vrot.lane.b32.xlu0 %v4841_v7, %s4755_s22 }
  0x8f   : > { %v473_v47 = vpop.permute.xlu1 %472  ;;  %653 = vmatprep.subr.mxu1 %v531_v39  ;;  %v471_v48 = vpop.permute.xlu0 %470 }
  0x90   : > { %v477_v49 = vsel %vm476_vm0, %v473_v47, %v475_v14  ;;  %v478_v50 = vsel %vm476_vm0, %v471_v48, %v473_v47  ;;  %v479_v51 = vsel %vm476_vm0, %v469_v35, %v471_v48  ;;  %654 = vmatpush1.msra.mxu1 %v530_v44  ;;  %v425_v14 = vrot.slane %v4951_v42, %v4914_v18 }
  0x91   : > { %v535_v53 = vmul.f32 %v519_v37, %v477_v49  ;;  %v533_v54 = vmul.f32 %v511_v40, %v479_v51  ;;  %v534_v55 = vmul.f32 %v515_v41, %v478_v50  ;;  %4527 = vmatmul.mubr.msk.f32.gmra.mxu0 %vm539_vm1, %v4525_v45  ;;  %4528 = vmatmul.mubr.msk.f32.vlgmr.msra.gmra.mxu1 %vm539_vm1, %v4524_v32 }
  0x92   : > { %693 = vmatprep.mubr.f32.mxu1 %v4747_v0  ;;  %764 = vmatprep.mubr.f32.mxu0 %v4747_v0  ;;  %v1203_v41 = vrot.slane %v5013_v31, %v4901_v12  ;;  %v1199_v50 = vrot.slane %v5013_v31, %v4903_v13 }
  0x93   : > { %v384_v57 = vpop.permute.xlu1 %383  ;;  %730 = vmatprep.subr.mxu0 %v533_v54  ;;  %807 = vmatprep.subr.mxu1 %v535_v53  ;;  %v382_v58 = vpop.permute.xlu0 %381 }
  0x94   : > { %v406_v59 = vsel %vm399_vm2, %v382_v58, %v384_v57  ;;  %731 = vmatpush1.msra.mxu0 %v532_v56  ;;  %808 = vmatpush1.msra.mxu1 %v534_v55  ;;  %v1211_v55 = vrot.slane %v5013_v31, %v4914_v18  ;;  %v1207_v56 = vrot.slane %v5013_v31, %v4917_v20 }
  0x95   : > { %v451_v60 = vmul.f32 %v417_v52, %v406_v59  ;;  %4529 = vmatmul.mubr.msk.f32.gmra.mxu1 %vm539_vm1, %v4525_v45  ;;  %4530 = vmatmul.mubr.msk.f32.vlgmr.msra.gmra.mxu0 %vm539_vm1, %v4524_v32 }
  0x96   : > { %770 = vmatprep.mubr.f32.mxu0 %v4747_v0  ;;  %841 = vmatprep.mubr.f32.mxu1 %v4747_v0 }
  0x97   : > { %v386_v62 = vpop.permute.xlu1 %385  ;;  %890 = vmatprep.subr.mxu0 %v451_v60  ;;  %v396_v63 = vpop.permute.xlu0 %395 }
  0x98   : > { %v407_v9 = vsel %vm399_vm2, %v396_v63, %v382_v58  ;;  %v405_v17 = vsel %vm399_vm2, %v384_v57, %v386_v62  ;;  %v4543_v57 = vld [vmem:[%s5814_s1 + $0x20] sm:$0xff] }
  0x99   : > { %v450_v10 = vmul.f32 %v413_v61, %v407_v9  ;;  %4531 = vmatmul.mubr.msk.f32.gmra.mxu0 %vm539_vm1, %v4525_v45  ;;  %4532 = vmatmul.mubr.msk.f32.vlgmr.msra.gmra.mxu1 %vm539_vm1, %v4524_v32  ;;  %v452_v32 = vmul.f32 %v421_v15, %v405_v17  ;;  %v1219_v9 = vrot.slane %v5013_v31, %v4926_v28  ;;  %v4544_v17 = vld [vmem:[%s5814_s1 + $0x28] sm:$0xff] }
  0x9a   : > { %847 = vmatprep.mubr.f32.mxu1 %v4747_v0  ;;  %924 = vmatprep.mubr.f32.mxu0 %v4747_v0 }
  0x9b   : > { %v390_v19 = vpop.permute.xlu1 %389  ;;  %891 = vmatpush1.msra.mxu0 %v450_v10  ;;  %v388_v21 = vpop.permute.xlu0 %387  ;;  %v1223_v10 = vrot.slane %v5013_v31, %v4928_v29 }
  0x9c   : > { %v404_v22 = vsel %vm399_vm2, %v386_v62, %v388_v21  ;;  %v403_v35 = vsel %vm399_vm2, %v388_v21, %v390_v19  ;;  %v1227_v62 = vrot.slane %v5013_v31, %v4923_v25 }
  0x9d   : > { %v453_v24 = vmul.f32 %v425_v14, %v404_v22  ;;  %4533 = vmatmul.mubr.msk.f32.gmra.mxu1 %vm539_vm1, %v4525_v45  ;;  %4534 = vmatmul.mubr.msk.f32.vlgmr.msra.gmra.mxu0 %vm539_vm1, %v458_v16  ;;  %v454_v45 = vmul.f32 %v429_v33, %v403_v35  ;;  %v5073_v14 = vld [vmem:[%s5815_s2 + $0x18] sm:$0xff] }
  0x9e   : > { %930 = vmatprep.mubr.f32.mxu0 %v4747_v0  ;;  %1001 = vmatprep.mubr.f32.mxu1 %v4747_v0 }
  0x9f   : > { %v394_v36 = vpop.permute.xlu1 %393  ;;  %967 = vmatprep.subr.mxu1 %v453_v24  ;;  %v392_v37 = vpop.permute.xlu0 %391 }
  0xa0   : > { %v400_v38 = vsel %vm399_vm2, %v394_v36, %v396_v63  ;;  %v401_v39 = vsel %vm399_vm2, %v392_v37, %v394_v36  ;;  %v402_v40 = vsel %vm399_vm2, %v390_v19, %v392_v37  ;;  %968 = vmatpush1.msra.mxu1 %v452_v32 }
  0xa1   : > { %v457_v42 = vmul.f32 %v441_v23, %v400_v38  ;;  %v455_v43 = vmul.f32 %v433_v26, %v402_v40  ;;  %v456_v44 = vmul.f32 %v437_v27, %v401_v39  ;;  %4535 = vmatmul.mubr.msk.f32.gmra.mxu0 %vm539_vm1, %v459_v34  ;;  %4536 = vmatmul.mubr.msk.f32.vlgmr.msra.gmra.mxu1 %vm539_vm1, %v458_v16 }
  0xa2   : > { %1007 = vmatprep.mubr.f32.mxu1 %v4747_v0  ;;  %1078 = vmatprep.mubr.f32.mxu0 %v4747_v0  ;;  %v1612_v27 = vrot.slane %v5073_v14, %v4901_v12  ;;  %v1608_v39 = vrot.slane %v5073_v14, %v4903_v13 }
  0xa3   : > { %v1171_v46 = vpop.permute.xlu1 %1170  ;;  %1044 = vmatprep.subr.mxu0 %v455_v43  ;;  %1121 = vmatprep.subr.mxu1 %v457_v42  ;;  %v1169_v47 = vpop.permute.xlu0 %1168 }
  0xa4   : > { %v1191_v48 = vsel %vm1184_vm3, %v1169_v47, %v1171_v46  ;;  %1045 = vmatpush1.msra.mxu0 %v454_v45  ;;  %1122 = vmatpush1.msra.mxu1 %v456_v44  ;;  %v1620_v44 = vrot.slane %v5073_v14, %v4914_v18  ;;  %v1616_v45 = vrot.slane %v5073_v14, %v4917_v20 }
  0xa5   : > { %v1237_v49 = vmul.f32 %v1203_v41, %v1191_v48  ;;  %4537 = vmatmul.mubr.msk.f32.gmra.mxu1 %vm539_vm1, %v459_v34  ;;  %4538 = vmatmul.mubr.msk.f32.vlgmr.msra.gmra.mxu0 %vm539_vm1, %v458_v16 }
  0xa6   : > { %1084 = vmatprep.mubr.f32.mxu0 %v4747_v0  ;;  %1155 = vmatprep.mubr.f32.mxu1 %v4747_v0 }
  0xa7   : > { %v1173_v51 = vpop.permute.xlu1 %1172  ;;  %1283 = vmatprep.subr.mxu0 %v1237_v49  ;;  %v1183_v52 = vpop.permute.xlu0 %1182 }
  0xa8   : > { %v1192_v53 = vsel %vm1184_vm3, %v1183_v52, %v1169_v47  ;;  %v1190_v58 = vsel %vm1184_vm3, %v1171_v46, %v1173_v51  ;;  %v5118_v46 = vld [vmem:[%s5814_s1 + $0x30] sm:$0xff] }
  0xa9   : > { %v1236_v54 = vmul.f32 %v1199_v50, %v1192_v53  ;;  %4539 = vmatmul.mubr.msk.f32.gmra.mxu0 %vm539_vm1, %v459_v34  ;;  %4540 = vmatmul.mubr.msk.f32.vlgmr.msra.gmra.mxu1 %vm539_vm1, %v458_v16  ;;  %v1238_v15 = vmul.f32 %v1207_v56, %v1190_v58  ;;  %v1215_v16 = vrot.slane %v5013_v31, %v4934_v30  ;;  %v5125_v50 = vld [vmem:[%s5815_s2 + $0x20] sm:$0xff]  ;;  %v5145_v58 = vld [vmem:[%s5814_s1 + $0x38] sm:$0xff] }
  0xaa   : > { %1161 = vmatprep.mubr.f32.mxu1 %v4747_v0  ;;  %1317 = vmatprep.mubr.f32.mxu0 %v4747_v0 }
  0xab   : > { %v1177_v59 = vpop.permute.xlu1 %1176  ;;  %1284 = vmatpush1.msra.mxu0 %v1236_v54  ;;  %v1175_v60 = vpop.permute.xlu0 %1174  ;;  %v1628_v54 = vrot.slane %v5073_v14, %v4926_v28 }
  0xac   : > { %v1189_v61 = vsel %vm1184_vm3, %v1173_v51, %v1175_v60  ;;  %v1188_v19 = vsel %vm1184_vm3, %v1175_v60, %v1177_v59 }
  0xad   : > { %v1239_v63 = vmul.f32 %v1211_v55, %v1189_v61  ;;  %4541 = vmatmul.mubr.msk.f32.gmra.mxu1 %vm539_vm1, %v459_v34  ;;  %4545 = vmatmul.mubr.msk.f32.vlgmr.msra.gmra.mxu0 %vm539_vm1, %v4543_v57  ;;  %v1240_v34 = vmul.f32 %v1215_v16, %v1188_v19  ;;  %v1632_v55 = vrot.slane %v5073_v14, %v4928_v29 }
  0xae   : > { %1323 = vmatprep.mubr.f32.mxu0 %v4747_v0  ;;  %1394 = vmatprep.mubr.f32.mxu1 %v4747_v0 }
  0xaf   : > { %v1181_v21 = vpop.permute.xlu1 %1180  ;;  %1360 = vmatprep.subr.mxu1 %v1239_v63  ;;  %v1179_v22 = vpop.permute.xlu0 %1178  ;;  %v2004_v63 = vrot.slane %v5125_v50, %v4914_v18 }
  0xb0   : > { %v1185_v23 = vsel %vm1184_vm3, %v1181_v21, %v1183_v52  ;;  %v1186_v24 = vsel %vm1184_vm3, %v1179_v22, %v1181_v21  ;;  %v1187_v26 = vsel %vm1184_vm3, %v1177_v59, %v1179_v22  ;;  %1361 = vmatpush1.msra.mxu1 %v1238_v15  ;;  %v1636_v52 = vrot.slane %v5073_v14, %v4923_v25 }
  0xb1   : > { %v1243_v31 = vmul.f32 %v1227_v62, %v1185_v23  ;;  %v1241_v32 = vmul.f32 %v1219_v9, %v1187_v26  ;;  %v1242_v33 = vmul.f32 %v1223_v10, %v1186_v24  ;;  %4546 = vmatmul.mubr.msk.f32.gmra.mxu0 %vm539_vm1, %v4544_v17  ;;  %4547 = vmatmul.mubr.msk.f32.vlgmr.msra.gmra.mxu1 %vm539_vm1, %v4543_v57 }
  0xb2   : > { %1400 = vmatprep.mubr.f32.mxu1 %v4747_v0  ;;  %1471 = vmatprep.mubr.f32.mxu0 %v4747_v0  ;;  %v1996_v59 = vrot.slane %v5125_v50, %v4901_v12  ;;  %v1992_v15 = vrot.slane %v5125_v50, %v4903_v13  ;;  %v2032_v26 = vmul.f32 %v2004_v63, %v4837_v6  ;;  %v5185_v6 = vld [vmem:[%s5815_s2 + $0x28] sm:$0xff] }
  0xb3   : > { %v1580_v35 = vpop.permute.xlu1 %1579  ;;  %1437 = vmatprep.subr.mxu0 %v1241_v32  ;;  %1514 = vmatprep.subr.mxu1 %v1243_v31  ;;  %v1578_v36 = vpop.permute.xlu0 %1577  ;;  %v2012_v31 = vrot.slane %v5125_v50, %v4926_v28 }
  0xb4   : > { %v1600_v37 = vsel %vm1593_vm4, %v1578_v36, %v1580_v35  ;;  %1438 = vmatpush1.msra.mxu0 %v1240_v34  ;;  %1515 = vmatpush1.msra.mxu1 %v1242_v33  ;;  %v2030_v22 = vmul.f32 %v1996_v59, %v4831_v4  ;;  %v2029_v32 = vmul.f32 %v1992_v15, %v4825_v2 }
  0xb5   : > { %v1646_v38 = vmul.f32 %v1612_v27, %v1600_v37  ;;  %4548 = vmatmul.mubr.msk.f32.gmra.mxu1 %vm539_vm1, %v4544_v17  ;;  %4549 = vmatmul.mubr.msk.f32.vlgmr.msra.gmra.mxu0 %vm539_vm1, %v4543_v57  ;;  %v2000_v27 = vrot.slane %v5125_v50, %v4917_v20  ;;  %v2020_v4 = vrot.slane %v5125_v50, %v4923_v25 }
  0xb6   : > { %1477 = vmatprep.mubr.f32.mxu0 %v4747_v0  ;;  %1548 = vmatprep.mubr.f32.mxu1 %v4747_v0  ;;  %v2405_v37 = vrot.slane %v5185_v6, %v4901_v12 }
  0xb7   : > { %v1582_v40 = vpop.permute.xlu1 %1581  ;;  %1692 = vmatprep.subr.mxu0 %v1646_v38  ;;  %v1592_v41 = vpop.permute.xlu0 %1591  ;;  %v2031_v33 = vmul.f32 %v2000_v27, %v4829_v3  ;;  %v2036_v38 = vmul.f32 %v2020_v4, %v4823_v1 }
  0xb8   : > { %v1601_v42 = vsel %vm1593_vm4, %v1592_v41, %v1578_v36  ;;  %v1599_v47 = vsel %vm1593_vm4, %v1580_v35, %v1582_v40  ;;  %v2034_v35 = vmul.f32 %v2012_v31, %v4843_v8  ;;  %v2008_v36 = vrot.slane %v5125_v50, %v4934_v30  ;;  %v4565_v8 = vld [vmem:[%s5814_s1 + $0x40] sm:$0xff] }
  0xb9   : > { %v1645_v43 = vmul.f32 %v1608_v39, %v1601_v42  ;;  %4550 = vmatmul.mubr.msk.f32.gmra.mxu0 %vm539_vm1, %v4544_v17  ;;  %4551 = vmatmul.mubr.msk.f32.vlgmr.msra.gmra.mxu1 %vm539_vm1, %v4543_v57  ;;  %v1647_v56 = vmul.f32 %v1616_v45, %v1599_v47  ;;  %v1624_v57 = vrot.slane %v5073_v14, %v4934_v30  ;;  %v4566_v45 = vld [vmem:[%s5814_s1 + $0x48] sm:$0xff] }
  0xba   : > { %1554 = vmatprep.mubr.f32.mxu1 %v4747_v0  ;;  %1726 = vmatprep.mubr.f32.mxu0 %v4747_v0  ;;  %v2033_v39 = vmul.f32 %v2008_v36, %v4835_v5  ;;  %v2401_v5 = vrot.slane %v5185_v6, %v4903_v13 }
  0xbb   : > { %v1586_v48 = vpop.permute.xlu1 %1585  ;;  %1693 = vmatpush1.msra.mxu0 %v1645_v43  ;;  %v1584_v49 = vpop.permute.xlu0 %1583  ;;  %v2413_v43 = vrot.slane %v5185_v6, %v4914_v18 }
  0xbc   : > { %v1598_v51 = vsel %vm1593_vm4, %v1582_v40, %v1584_v49  ;;  %v1597_v60 = vsel %vm1593_vm4, %v1584_v49, %v1586_v48  ;;  %v2421_v49 = vrot.slane %v5185_v6, %v4926_v28 }
  0xbd   : > { %v1648_v53 = vmul.f32 %v1620_v44, %v1598_v51  ;;  %4552 = vmatmul.mubr.msk.f32.gmra.mxu1 %vm539_vm1, %v4544_v17  ;;  %4556 = vmatmul.mubr.msk.f32.vlgmr.msra.gmra.mxu0 %vm539_vm1, %v5118_v46  ;;  %v1649_v21 = vmul.f32 %v1624_v57, %v1597_v60  ;;  %v5249_v60 = vld [vmem:[%s5815_s2 + $0x30] sm:$0xff] }
  0xbe   : > { %1732 = vmatprep.mubr.f32.mxu0 %v4747_v0  ;;  %1803 = vmatprep.mubr.f32.mxu1 %v4747_v0  ;;  %v2810_v4 = vrot.slane %v5249_v60, %v4903_v13 }
  0xbf   : > { %v1590_v61 = vpop.permute.xlu1 %1589  ;;  %1769 = vmatprep.subr.mxu1 %v1648_v53  ;;  %v1588_v62 = vpop.permute.xlu0 %1587  ;;  %v2409_v53 = vrot.slane %v5185_v6, %v4917_v20 }
  0xc0   : > { %v1594_v9 = vsel %vm1593_vm4, %v1590_v61, %v1592_v41  ;;  %v1595_v10 = vsel %vm1593_vm4, %v1588_v62, %v1590_v61  ;;  %v1596_v14 = vsel %vm1593_vm4, %v1586_v48, %v1588_v62  ;;  %1770 = vmatpush1.msra.mxu1 %v1647_v56  ;;  %v2016_v41 = vrot.slane %v5125_v50, %v4928_v29 }
  0xc1   : > { %v1652_v16 = vmul.f32 %v1636_v52, %v1594_v9  ;;  %v1650_v17 = vmul.f32 %v1628_v54, %v1596_v14  ;;  %v1651_v19 = vmul.f32 %v1632_v55, %v1595_v10  ;;  %4557 = vmatmul.mubr.msk.f32.gmra.mxu0 %vm539_vm1, %v5145_v58  ;;  %4558 = vmatmul.mubr.msk.f32.vlgmr.msra.gmra.mxu1 %vm539_vm1, %v5118_v46 }
  0xc2   : > { %1809 = vmatprep.mubr.f32.mxu1 %v4747_v0  ;;  %1880 = vmatprep.mubr.f32.mxu0 %v4747_v0  ;;  %v2035_v48 = vmul.f32 %v2016_v41, %v4841_v7  ;;  %v2429_v55 = vrot.slane %v5185_v6, %v4923_v25  ;;  %v2417_v62 = vrot.slane %v5185_v6, %v4934_v30 }
  0xc3   : > { %1846 = vmatprep.subr.mxu0 %v1650_v17  ;;  %1923 = vmatprep.subr.mxu1 %v1652_v16  ;;  %v5168_v23 = vpop.permute.xlu1 %2374  ;;  %v2373_v24 = vpop.permute.xlu0 %2372  ;;  %v2814_v10 = vrot.slane %v5249_v60, %v4901_v12 }
  0xc4   : > { %1847 = vmatpush1.msra.mxu0 %v1649_v21  ;;  %1924 = vmatpush1.msra.mxu1 %v1651_v19  ;;  %v2392_v3 = vsel %vm2386_vm5, %v2373_v24, %v5168_v23  ;;  %v2425_v19 = vrot.slane %v5185_v6, %v4928_v29  ;;  %v4576_v21 = vld [vmem:[%s5814_s1 + $0x50] sm:$0xff]  ;;  %v4577_v6 = vld [vmem:[%s5814_s1 + $0x58] sm:$0xff] }
  0xc5   : > { %4559 = vmatmul.mubr.msk.f32.gmra.mxu1 %vm539_vm1, %v5145_v58  ;;  %4560 = vmatmul.mubr.msk.f32.vlgmr.msra.gmra.mxu0 %vm539_vm1, %v5118_v46  ;;  %v2439_v42 = vmul.f32 %v2405_v37, %v2392_v3 }
  0xc6   : > { %1886 = vmatprep.mubr.f32.mxu0 %v4747_v0  ;;  %1957 = vmatprep.mubr.f32.mxu1 %v4747_v0 }
  0xc7   : > { %2076 = vmatprep.subr.mxu0 %v2030_v22  ;;  %v2377_v2 = vpop.permute.xlu1 %2376  ;;  %2153 = vmatprep.subr.mxu1 %v2032_v26  ;;  %v2371_v34 = vpop.permute.xlu0 %2370  ;;  %v2822_v26 = vrot.slane %v5249_v60, %v4914_v18 }
  0xc8   : > { %2077 = vmatpush1.msra.mxu0 %v2029_v32  ;;  %v2391_v7 = vsel %vm2386_vm5, %v5168_v23, %v2377_v2 }
  0xc9   : > { %4561 = vmatmul.mubr.msk.f32.gmra.mxu0 %vm539_vm1, %v5145_v58  ;;  %4562 = vmatmul.mubr.msk.f32.vlgmr.msra.gmra.mxu1 %vm539_vm1, %v5118_v46  ;;  %v2393_v46 = vsel %vm2386_vm5, %v2371_v34, %v2373_v24  ;;  %v2440_v61 = vmul.f32 %v2409_v53, %v2391_v7  ;;  %v4587_v53 = vld [vmem:[%s5814_s1 + $0x60] sm:$0xff] }
  0xca   : > { %1963 = vmatprep.mubr.f32.mxu1 %v4747_v0  ;;  %2110 = vmatprep.mubr.f32.mxu0 %v4747_v0  ;;  %v2438_v54 = vmul.f32 %v2401_v5, %v2393_v46  ;;  %v2826_v5 = vrot.slane %v5249_v60, %v4934_v30 }
  0xcb   : > { %2154 = vmatpush1.msra.mxu1 %v2031_v33  ;;  %v2381_v1 = vpop.permute.xlu1 %2380  ;;  %2230 = vmatprep.subr.mxu0 %v2034_v35  ;;  %v2379_v40 = vpop.permute.xlu0 %2378  ;;  %v2830_v35 = vrot.slane %v5249_v60, %v4926_v28 }
  0xcc   : > { %2307 = vmatprep.subr.mxu1 %v2036_v38  ;;  %v2390_v44 = vsel %vm2386_vm5, %v2377_v2, %v2379_v40  ;;  %v2389_v63 = vsel %vm2386_vm5, %v2379_v40, %v2381_v1  ;;  %v2818_v38 = vrot.slane %v5249_v60, %v4917_v20 }
  0xcd   : > { %4563 = vmatmul.mubr.msk.f32.gmra.mxu1 %vm539_vm1, %v5145_v58  ;;  %4567 = vmatmul.mubr.msk.f32.vlgmr.msra.gmra.mxu0 %vm539_vm1, %v4565_v8  ;;  %v2441_v51 = vmul.f32 %v2413_v43, %v2390_v44  ;;  %v2442_v17 = vmul.f32 %v2417_v62, %v2389_v63  ;;  %v5309_v43 = vld [vmem:[%s5815_s2 + $0x38] sm:$0xff] }
  0xce   : > { %2116 = vmatprep.mubr.f32.mxu0 %v4747_v0  ;;  %2187 = vmatprep.mubr.f32.mxu1 %v4747_v0 }
  0xcf   : > { %2231 = vmatpush1.msra.mxu0 %v2033_v39  ;;  %v2385_v47 = vpop.permute.xlu1 %2384  ;;  %v2383_v50 = vpop.permute.xlu0 %2382 }
  0xd0   : > { %2485 = vmatprep.subr.mxu0 %v2439_v42  ;;  %v2388_v52 = vsel %vm2386_vm5, %v2381_v1, %v2383_v50  ;;  %v2394_v59 = vsel %vm2386_vm5, %v2385_v47, %v2371_v34  ;;  %v2387_v22 = vsel %vm2386_vm5, %v2383_v50, %v2385_v47  ;;  %v2838_v1 = vrot.slane %v5249_v60, %v4923_v25 }
  0xd1   : > { %4569 = vmatmul.mubr.msk.f32.vlgmr.msra.gmra.mxu1 %vm539_vm1, %v4565_v8  ;;  %4568 = vmatmul.mubr.msk.f32.gmra.mxu0 %vm539_vm1, %v4566_v45  ;;  %v2443_v56 = vmul.f32 %v2421_v49, %v2388_v52  ;;  %v2445_v9 = vmul.f32 %v2429_v55, %v2394_v59  ;;  %v2444_v32 = vmul.f32 %v2425_v19, %v2387_v22 }
  0xd2   : > { %2193 = vmatprep.mubr.f32.mxu1 %v4747_v0  ;;  %2264 = vmatprep.mubr.f32.mxu0 %v4747_v0  ;;  %v3223_v47 = vrot.slane %v5309_v43, %v4901_v12  ;;  %v2834_v52 = vrot.slane %v5249_v60, %v4928_v29  ;;  %v3219_v60 = vrot.slane %v5309_v43, %v4903_v13 }
  0xd3   : > { %2308 = vmatpush1.msra.mxu1 %v2035_v48  ;;  %v2784_v57 = vpop.permute.xlu1 %2783  ;;  %v2782_v58 = vpop.permute.xlu0 %2781 }
  0xd4   : > { %2562 = vmatprep.subr.mxu1 %v2441_v51  ;;  %v2801_v16 = vsel %vm2795_vm6, %v2782_v58, %v2784_v57 }
  0xd5   : > { %4570 = vmatmul.mubr.msk.f32.gmra.mxu1 %vm539_vm1, %v4566_v45  ;;  %4571 = vmatmul.mubr.msk.f32.vlgmr.msra.gmra.mxu0 %vm539_vm1, %v4565_v8  ;;  %v2848_v23 = vmul.f32 %v2814_v10, %v2801_v16  ;;  %v3239_v10 = vrot.slane %v5309_v43, %v4926_v28  ;;  %v3227_v16 = vrot.slane %v5309_v43, %v4917_v20 }
  0xd6   : > { %2486 = vmatpush1.msra.mxu0 %v2438_v54  ;;  %2270 = vmatprep.mubr.f32.mxu0 %v4747_v0 }
  0xd7   : > { %2341 = vmatprep.mubr.f32.mxu1 %v4747_v0  ;;  %2639 = vmatprep.subr.mxu0 %v2443_v56  ;;  %v2786_v14 = vpop.permute.xlu1 %2785  ;;  %v2780_v15 = vpop.permute.xlu0 %2779  ;;  %v3231_v56 = vrot.slane %v5309_v43, %v4914_v18 }
  0xd8   : > { %v2802_v2 = vsel %vm2795_vm6, %v2780_v15, %v2782_v58 }
  0xd9   : > { %4573 = vmatmul.mubr.msk.f32.vlgmr.msra.gmra.mxu1 %vm539_vm1, %v4565_v8  ;;  %4572 = vmatmul.mubr.msk.f32.gmra.mxu0 %vm539_vm1, %v4566_v45  ;;  %v2847_v3 = vmul.f32 %v2810_v4, %v2802_v2  ;;  %v2800_v8 = vsel %vm2795_vm6, %v2784_v57, %v2786_v14 }
  0xda   : > { %2563 = vmatpush1.msra.mxu1 %v2440_v61  ;;  %2347 = vmatprep.mubr.f32.mxu1 %v4747_v0  ;;  %v2849_v44 = vmul.f32 %v2818_v38, %v2800_v8  ;;  %v4588_v61 = vld [vmem:[%s5814_s1 + $0x68] sm:$0xff] }
  0xdb   : > { %2716 = vmatprep.subr.mxu1 %v2445_v9  ;;  %2519 = vmatprep.mubr.f32.mxu0 %v4747_v0  ;;  %v2790_v24 = vpop.permute.xlu1 %2789  ;;  %v2788_v27 = vpop.permute.xlu0 %2787 }
  0xdc   : > { %v2799_v31 = vsel %vm2795_vm6, %v2786_v14, %v2788_v27 }
  0xdd   : > { %4574 = vmatmul.mubr.msk.f32.gmra.mxu1 %vm539_vm1, %v4566_v45  ;;  %4578 = vmatmul.mubr.msk.f32.vlgmr.msra.gmra.mxu0 %vm539_vm1, %v4576_v21  ;;  %v2850_v33 = vmul.f32 %v2822_v26, %v2799_v31  ;;  %v2798_v45 = vsel %vm2795_vm6, %v2788_v27, %v2790_v24  ;;  %v5369_v27 = vld [vmem:[%s5815_s2 + $0x40] sm:$0xff] }
  0xde   : > { %2640 = vmatpush1.msra.mxu0 %v2442_v17  ;;  %2525 = vmatprep.mubr.f32.mxu0 %v4747_v0  ;;  %v2851_v51 = vmul.f32 %v2826_v5, %v2798_v45  ;;  %v3632_v2 = vrot.slane %v5369_v27, %v4901_v12  ;;  %v4598_v12 = vld [vmem:[%s5814_s1 + $0x70] sm:$0xff]  ;;  %v3648_v5 = vrot.slane %v5369_v27, %v4926_v28 }
  0xdf   : > { %2596 = vmatprep.mubr.f32.mxu1 %v4747_v0  ;;  %2894 = vmatprep.subr.mxu0 %v2848_v23  ;;  %v2794_v34 = vpop.permute.xlu1 %2793  ;;  %v2792_v36 = vpop.permute.xlu0 %2791  ;;  %v3656_v28 = vrot.slane %v5369_v27, %v4923_v25 }
  0xe0   : > { %v2797_v37 = vsel %vm2795_vm6, %v2790_v24, %v2792_v36  ;;  %v2803_v42 = vsel %vm2795_vm6, %v2794_v34, %v2780_v15  ;;  %v2796_v54 = vsel %vm2795_vm6, %v2792_v36, %v2794_v34 }
  0xe1   : > { %4580 = vmatmul.mubr.msk.f32.vlgmr.msra.gmra.mxu1 %vm539_vm1, %v4576_v21  ;;  %4579 = vmatmul.mubr.msk.f32.gmra.mxu0 %vm539_vm1, %v4577_v6  ;;  %v2852_v39 = vmul.f32 %v2830_v35, %v2797_v37  ;;  %v2854_v46 = vmul.f32 %v2838_v1, %v2803_v42  ;;  %v2853_v59 = vmul.f32 %v2834_v52, %v2796_v54 }
  0xe2   : > { %2717 = vmatpush1.msra.mxu1 %v2444_v32  ;;  %2602 = vmatprep.mubr.f32.mxu1 %v4747_v0  ;;  %v3235_v32 = vrot.slane %v5309_v43, %v4934_v30  ;;  %v3243_v37 = vrot.slane %v5309_v43, %v4928_v29  ;;  %v3640_v1 = vrot.slane %v5369_v27, %v4914_v18 }
  0xe3   : > { %2673 = vmatprep.mubr.f32.mxu0 %v4747_v0  ;;  %2971 = vmatprep.subr.mxu1 %v2850_v33  ;;  %v3193_v40 = vpop.permute.xlu1 %3192  ;;  %v3191_v41 = vpop.permute.xlu0 %3190  ;;  %v3628_v42 = vrot.slane %v5369_v27, %v4903_v13  ;;  %v3644_v52 = vrot.slane %v5369_v27, %v4934_v30  ;;  %v4609_v30 = vld [vmem:[%s5814_s1 + $0x80] sm:$0xff] }
  0xe4   : > { %v3210_v50 = vsel %vm3204_vm7, %v3191_v41, %v3193_v40 }
  0xe5   : > { %4581 = vmatmul.mubr.msk.f32.gmra.mxu1 %vm539_vm1, %v4577_v6  ;;  %4582 = vmatmul.mubr.msk.f32.vlgmr.msra.gmra.mxu0 %vm539_vm1, %v4576_v21  ;;  %v3257_v7 = vmul.f32 %v3223_v47, %v3210_v50  ;;  %v3636_v47 = vrot.slane %v5369_v27, %v4917_v20 }
  0xe6   : > { %2895 = vmatpush1.msra.mxu0 %v2847_v3  ;;  %2679 = vmatprep.mubr.f32.mxu0 %v4747_v0 }
  0xe7   : > { %2750 = vmatprep.mubr.f32.mxu1 %v4747_v0  ;;  %3048 = vmatprep.subr.mxu0 %v2852_v39  ;;  %v3195_v48 = vpop.permute.xlu1 %3194  ;;  %v3189_v49 = vpop.permute.xlu0 %3188 }
  0xe8   : > { %v3211_v62 = vsel %vm3204_vm7, %v3189_v49, %v3191_v41  ;;  %v3209_v19 = vsel %vm3204_vm7, %v3193_v40, %v3195_v48 }
  0xe9   : > { %4584 = vmatmul.mubr.msk.f32.vlgmr.msra.gmra.mxu1 %vm539_vm1, %v4576_v21  ;;  %4583 = vmatmul.mubr.msk.f32.gmra.mxu0 %vm539_vm1, %v4577_v6  ;;  %v3256_v17 = vmul.f32 %v3219_v60, %v3211_v62  ;;  %v3247_v21 = vrot.slane %v5309_v43, %v4923_v25  ;;  %v3258_v31 = vmul.f32 %v3227_v16, %v3209_v19  ;;  %v4599_v43 = vld [vmem:[%s5814_s1 + $0x78] sm:$0xff] }
  0xea   : > { %2972 = vmatpush1.msra.mxu1 %v2849_v44  ;;  %2756 = vmatprep.mubr.f32.mxu1 %v4747_v0 }
  0xeb   : > { %3125 = vmatprep.subr.mxu1 %v2854_v46  ;;  %2928 = vmatprep.mubr.f32.mxu0 %v4747_v0  ;;  %v3199_v55 = vpop.permute.xlu1 %3198  ;;  %v3197_v57 = vpop.permute.xlu0 %3196 }
  0xec   : > { %v3208_v58 = vsel %vm3204_vm7, %v3195_v48, %v3197_v57  ;;  %v3207_v4 = vsel %vm3204_vm7, %v3197_v57, %v3199_v55 }
  0xed   : > { %4585 = vmatmul.mubr.msk.f32.gmra.mxu1 %vm539_vm1, %v4577_v6  ;;  %4589 = vmatmul.mubr.msk.f32.vlgmr.msra.gmra.mxu0 %vm539_vm1, %v4587_v53  ;;  %v3259_v63 = vmul.f32 %v3231_v56, %v3208_v58  ;;  %v3260_v36 = vmul.f32 %v3235_v32, %v3207_v4 }
  0xee   : > { %3049 = vmatpush1.msra.mxu0 %v2851_v51  ;;  %2934 = vmatprep.mubr.f32.mxu0 %v4747_v0 }
  0xef   : > { %3005 = vmatprep.mubr.f32.mxu1 %v4747_v0  ;;  %3303 = vmatprep.subr.mxu0 %v3257_v7  ;;  %v3203_v9 = vpop.permute.xlu1 %3202  ;;  %v3201_v14 = vpop.permute.xlu0 %3200  ;;  %v3652_v7 = vrot.slane %v5369_v27, %v4928_v29  ;;  %v4610_v29 = vld [vmem:[%s5814_s1 + $0x88] sm:$0xff] }
  0xf0   : > { %v3206_v15 = vsel %vm3204_vm7, %v3199_v55, %v3201_v14  ;;  %v3212_v26 = vsel %vm3204_vm7, %v3203_v9, %v3189_v49  ;;  %v3205_v38 = vsel %vm3204_vm7, %v3201_v14, %v3203_v9 }
  0xf1   : > { %4591 = vmatmul.mubr.msk.f32.vlgmr.msra.gmra.mxu1 %vm539_vm1, %v4587_v53  ;;  %4590 = vmatmul.mubr.msk.f32.gmra.mxu0 %vm539_vm1, %v4588_v61  ;;  %v3261_v22 = vmul.f32 %v3239_v10, %v3206_v15  ;;  %v3263_v6 = vmul.f32 %v3247_v21, %v3212_v26  ;;  %v3262_v41 = vmul.f32 %v3243_v37, %v3205_v38 }
  0xf2   : > { %3126 = vmatpush1.msra.mxu1 %v2853_v59  ;;  %3011 = vmatprep.mubr.f32.mxu1 %v4747_v0 }
  0xf3   : > { %3082 = vmatprep.mubr.f32.mxu0 %v4747_v0  ;;  %3380 = vmatprep.subr.mxu1 %v3259_v63  ;;  %v3602_v23 = vpop.permute.xlu1 %3601  ;;  %v3600_v24 = vpop.permute.xlu0 %3599 }
  0xf4   : > { %v3619_v35 = vsel %vm3613_vm8, %v3600_v24, %v3602_v23 }
  0xf5   : > { %4592 = vmatmul.mubr.msk.f32.gmra.mxu1 %vm539_vm1, %v4588_v61  ;;  %4593 = vmatmul.mubr.msk.f32.vlgmr.msra.gmra.mxu0 %vm539_vm1, %v4587_v53  ;;  %v3666_v3 = vmul.f32 %v3632_v2, %v3619_v35 }
  0xf6   : > { %3304 = vmatpush1.msra.mxu0 %v3256_v17  ;;  %3088 = vmatprep.mubr.f32.mxu0 %v4747_v0 }
  0xf7   : > { %3159 = vmatprep.mubr.f32.mxu1 %v4747_v0  ;;  %3457 = vmatprep.subr.mxu0 %v3261_v22  ;;  %v3604_v33 = vpop.permute.xlu1 %3603  ;;  %v3598_v34 = vpop.permute.xlu0 %3597 }
  0xf8   : > { %v3620_v18 = vsel %vm3613_vm8, %v3598_v34, %v3600_v24  ;;  %v3618_v49 = vsel %vm3613_vm8, %v3602_v23, %v3604_v33 }
  0xf9   : > { %4595 = vmatmul.mubr.msk.f32.vlgmr.msra.gmra.mxu1 %vm539_vm1, %v4587_v53  ;;  %4594 = vmatmul.mubr.msk.f32.gmra.mxu0 %vm539_vm1, %v4588_v61  ;;  %v3665_v48 = vmul.f32 %v3628_v42, %v3620_v18  ;;  %v3667_v20 = vmul.f32 %v3636_v47, %v3618_v49 }
  0xfa   : > { %3381 = vmatpush1.msra.mxu1 %v3258_v31  ;;  %3165 = vmatprep.mubr.f32.mxu1 %v4747_v0 }
  0xfb   : > { %3534 = vmatprep.subr.mxu1 %v3263_v6  ;;  %3337 = vmatprep.mubr.f32.mxu0 %v4747_v0  ;;  %v3608_v8 = vpop.permute.xlu1 %3607  ;;  %v3606_v39 = vpop.permute.xlu0 %3605 }
  0xfc   : > { %v3617_v40 = vsel %vm3613_vm8, %v3604_v33, %v3606_v39  ;;  %v3616_v53 = vsel %vm3613_vm8, %v3606_v39, %v3608_v8 }
  0xfd   : > { %4596 = vmatmul.mubr.msk.f32.gmra.mxu1 %vm539_vm1, %v4588_v61  ;;  %4600 = vmatmul.mubr.msk.f32.vlgmr.msra.gmra.mxu0 %vm539_vm1, %v4598_v12  ;;  %v3668_v44 = vmul.f32 %v3640_v1, %v3617_v40  ;;  %v3669_v54 = vmul.f32 %v3644_v52, %v3616_v53 }
  0xfe   : > { %3458 = vmatpush1.msra.mxu0 %v3260_v36  ;;  %3343 = vmatprep.mubr.f32.mxu0 %v4747_v0 }
  0xff   : > { %3414 = vmatprep.mubr.f32.mxu1 %v4747_v0  ;;  %3712 = vmatprep.subr.mxu0 %v3666_v3  ;;  %v3612_v13 = vpop.permute.xlu1 %3611 }
 0x100   : > { %v3610_v45 = vpop.permute.xlu0 %3609  ;;  %v3621_v51 = vsel %vm3613_vm8, %v3612_v13, %v3598_v34 }
 0x101   : > { %4602 = vmatmul.mubr.msk.f32.vlgmr.msra.gmra.mxu1 %vm539_vm1, %v4598_v12  ;;  %4601 = vmatmul.mubr.msk.f32.gmra.mxu0 %vm539_vm1, %v4599_v43  ;;  %v3615_v46 = vsel %vm3613_vm8, %v3608_v8, %v3610_v45  ;;  %v3672_v25 = vmul.f32 %v3656_v28, %v3621_v51  ;;  %v3614_v55 = vsel %vm3613_vm8, %v3610_v45, %v3612_v13 }
 0x102   : > { %3535 = vmatpush1.msra.mxu1 %v3262_v41  ;;  %3420 = vmatprep.mubr.f32.mxu1 %v4747_v0  ;;  %v3670_v50 = vmul.f32 %v3648_v5, %v3615_v46  ;;  %v3671_v56 = vmul.f32 %v3652_v7, %v3614_v55 }
 0x103   : > { %3491 = vmatprep.mubr.f32.mxu0 %v4747_v0  ;;  %3789 = vmatprep.subr.mxu1 %v3668_v44 }
 0x105   : > { %4603 = vmatmul.mubr.msk.f32.gmra.mxu1 %vm539_vm1, %v4599_v43  ;;  %4604 = vmatmul.mubr.msk.f32.vlgmr.msra.gmra.mxu0 %vm539_vm1, %v4598_v12 }
 0x106   : > { %3713 = vmatpush1.msra.mxu0 %v3665_v48  ;;  %3497 = vmatprep.mubr.f32.mxu0 %v4747_v0 }
 0x107   : > { %3568 = vmatprep.mubr.f32.mxu1 %v4747_v0  ;;  %3866 = vmatprep.subr.mxu0 %v3670_v50 }
 0x109   : > { %4605 = vmatmul.mubr.msk.f32.gmra.mxu0 %vm539_vm1, %v4599_v43  ;;  %4606 = vmatmul.mubr.msk.f32.vlgmr.msra.gmra.mxu1 %vm539_vm1, %v4598_v12 }
 0x10a   : > { %3790 = vmatpush1.msra.mxu1 %v3667_v20  ;;  %3574 = vmatprep.mubr.f32.mxu1 %v4747_v0 }
 0x10b   : > { %3943 = vmatprep.subr.mxu1 %v3672_v25  ;;  %3746 = vmatprep.mubr.f32.mxu0 %v4747_v0 }
 0x10d   : > { %4607 = vmatmul.mubr.msk.f32.gmra.mxu1 %vm539_vm1, %v4599_v43  ;;  %4611 = vmatmul.mubr.msk.f32.vlgmr.msra.gmra.mxu0 %vm539_vm1, %v4609_v30 }
 0x10e   : > { %3867 = vmatpush1.msra.mxu0 %v3669_v54  ;;  %3752 = vmatprep.mubr.f32.mxu0 %v4747_v0 }
 0x10f   : > { %3823 = vmatprep.mubr.f32.mxu1 %v4747_v0 }
 0x111   : > { %4612 = vmatmul.mubr.msk.f32.gmra.mxu0 %vm539_vm1, %v4610_v29  ;;  %4613 = vmatmul.mubr.msk.f32.vlgmr.msra.gmra.mxu1 %vm539_vm1, %v4609_v30 }
 0x112   : > { %3944 = vmatpush1.msra.mxu1 %v3671_v56  ;;  %3829 = vmatprep.mubr.f32.mxu1 %v4747_v0 }
 0x113   : > { %3900 = vmatprep.mubr.f32.mxu0 %v4747_v0 }
 0x115   : > { %4614 = vmatmul.mubr.msk.f32.gmra.mxu1 %vm539_vm1, %v4610_v29  ;;  %4615 = vmatmul.mubr.msk.f32.vlgmr.msra.gmra.mxu0 %vm539_vm1, %v4609_v30 }
 0x116   : > { %3906 = vmatprep.mubr.f32.mxu0 %v4747_v0  ;;  %3977 = vmatprep.mubr.f32.mxu1 %v4747_v0 }
 0x119   : > { %4616 = vmatmul.mubr.msk.f32.gmra.mxu0 %vm539_vm1, %v4610_v29  ;;  %4617 = vmatmul.mubr.msk.f32.vlgmr.msra.gmra.mxu1 %vm539_vm1, %v4609_v30 }
 0x11a   : > { %3983 = vmatprep.mubr.f32.mxu1 %v4747_v0 }
 0x11d   : > { %4618 = vmatmul.mubr.msk.f32.gmra.mxu1 %vm539_vm1, %v4610_v29 }
 0x14d   : > { %v612_v11 = vpop.f32.mrf.mxu0 }
 0x14f   : > { %v614_v57 = vpop.f32.mrf.mxu0 }
 0x151   : > { %v618_v58 = vpop.f32.mrf.mxu0  ;;  %v689_v59 = vpop.f32.mrf.mxu1 }
 0x153   : > { %v620_v60 = vpop.f32.mrf.mxu0  ;;  %v691_v61 = vpop.f32.mrf.mxu1 }
 0x155   : > { %v695_v62 = vpop.f32.mrf.mxu1  ;;  %v766_v63 = vpop.f32.mrf.mxu0 }
 0x157   : > { %v697_v9 = vpop.f32.mrf.mxu1  ;;  %v768_v10 = vpop.f32.mrf.mxu0 }
 0x159   : > { %v772_v14 = vpop.f32.mrf.mxu0  ;;  %v843_v15 = vpop.f32.mrf.mxu1 }
 0x15b   : > { %v774_v16 = vpop.f32.mrf.mxu0  ;;  %v845_v17 = vpop.f32.mrf.mxu1 }
 0x15d   : > { %v849_v19 = vpop.f32.mrf.mxu1  ;;  %v926_v21 = vpop.f32.mrf.mxu0 }
 0x15e   : > { %v927_v22 = vadd.f32 %v926_v21, %v612_v11 }
 0x15f   : > { %v851_v0 = vpop.f32.mrf.mxu1  ;;  %v928_v23 = vpop.f32.mrf.mxu0 }
 0x160   : > { %v929_v24 = vadd.f32 %v928_v23, %v614_v57 }
 0x161   : > { %v932_v26 = vpop.f32.mrf.mxu0  ;;  %v1003_v27 = vpop.f32.mrf.mxu1 }
 0x162   : > { %v933_v31 = vadd.f32 %v932_v26, %v618_v58  ;;  %v1004_v32 = vadd.f32 %v1003_v27, %v689_v59 }
 0x163   : > { %v934_v4 = vpop.f32.mrf.mxu0  ;;  %v1005_v6 = vpop.f32.mrf.mxu1 }
 0x164   : > { %v935_v2 = vadd.f32 %v934_v4, %v620_v60  ;;  %v1006_v33 = vadd.f32 %v1005_v6, %v691_v61 }
 0x165   : > { %v1009_v34 = vpop.f32.mrf.mxu1  ;;  %v1080_v35 = vpop.f32.mrf.mxu0 }
 0x166   : > { %v1010_v36 = vadd.f32 %v1009_v34, %v695_v62  ;;  %v1081_v37 = vadd.f32 %v1080_v35, %v766_v63 }
 0x167   : > { %v1011_v12 = vpop.f32.mrf.mxu1  ;;  %v1082_v38 = vpop.f32.mrf.mxu0 }
 0x168   : > { %v1012_v3 = vadd.f32 %v1011_v12, %v697_v9  ;;  %v1083_v8 = vadd.f32 %v1082_v38, %v768_v10 }
 0x169   : > { %v1086_v1 = vpop.f32.mrf.mxu0  ;;  %v1157_v39 = vpop.f32.mrf.mxu1 }
 0x16a   : > { %v1087_v40 = vadd.f32 %v1086_v1, %v772_v14  ;;  %v1158_v41 = vadd.f32 %v1157_v39, %v843_v15 }
 0x16b   : > { %v1088_v42 = vpop.f32.mrf.mxu0  ;;  %v1159_v43 = vpop.f32.mrf.mxu1 }
 0x16c   : > { %v1089_v18 = vadd.f32 %v1088_v42, %v774_v16  ;;  %v1160_v44 = vadd.f32 %v1159_v43, %v845_v17 }
 0x16d   : > { %v1163_v5 = vpop.f32.mrf.mxu1  ;;  %v1319_v45 = vpop.f32.mrf.mxu0 }
 0x16e   : > { %v1164_v13 = vadd.f32 %v1163_v5, %v849_v19  ;;  %v1561_v46 = vadd.f32 %v1319_v45, %v927_v22 }
 0x16f   : > { %v1165_v47 = vpop.f32.mrf.mxu1  ;;  %v1321_v48 = vpop.f32.mrf.mxu0 }
 0x170   : > { %v1166_v49 = vadd.f32 %v1165_v47, %v851_v0  ;;  %v1562_v28 = vadd.f32 %v1321_v48, %v929_v24 }
 0x171   : > { %v1325_v50 = vpop.f32.mrf.mxu0  ;;  %v1396_v51 = vpop.f32.mrf.mxu1 }
 0x172   : > { %v1569_v20 = vadd.f32 %v1325_v50, %v933_v31  ;;  %v1563_v52 = vadd.f32 %v1396_v51, %v1004_v32 }
 0x173   : > { %v1327_v53 = vpop.f32.mrf.mxu0  ;;  %v1398_v25 = vpop.f32.mrf.mxu1 }
 0x174   : > { %v1570_v54 = vadd.f32 %v1327_v53, %v935_v2  ;;  %v1564_v7 = vadd.f32 %v1398_v25, %v1006_v33 }
 0x175   : > { %v1402_v30 = vpop.f32.mrf.mxu1  ;;  %v1473_v55 = vpop.f32.mrf.mxu0 }
 0x176   : > { %v1571_v56 = vadd.f32 %v1402_v30, %v1010_v36  ;;  %v1565_v29 = vadd.f32 %v1473_v55, %v1081_v37 }
 0x177   : > { %v1404_v11 = vpop.f32.mrf.mxu1  ;;  %v1475_v57 = vpop.f32.mrf.mxu0 }
 0x178   : > { %v1572_v58 = vadd.f32 %v1404_v11, %v1012_v3  ;;  %v1566_v59 = vadd.f32 %v1475_v57, %v1083_v8 }
 0x179   : > { %v1479_v60 = vpop.f32.mrf.mxu0  ;;  %v1550_v61 = vpop.f32.mrf.mxu1 }
 0x17a   : > { %v1573_v62 = vadd.f32 %v1479_v60, %v1087_v40  ;;  %v1567_v63 = vadd.f32 %v1550_v61, %v1158_v41 }
 0x17b   : > { %v1481_v9 = vpop.f32.mrf.mxu0  ;;  %v1552_v10 = vpop.f32.mrf.mxu1 }
 0x17c   : > { %v1574_v14 = vadd.f32 %v1481_v9, %v1089_v18  ;;  %v1568_v15 = vadd.f32 %v1552_v10, %v1160_v44 }
 0x17d   : > { %v1556_v16 = vpop.f32.mrf.mxu1  ;;  %v1728_v17 = vpop.f32.mrf.mxu0 }
 0x17e   : > { %v1575_v19 = vadd.f32 %v1556_v16, %v1164_v13  ;;  %v5464_v21 = vadd.f32 %v1728_v17, %v1561_v46 }
 0x17f   : > { %v1558_v22 = vpop.f32.mrf.mxu1  ;;  %v1730_v0 = vpop.f32.mrf.mxu0 }
 0x180   : > { %v1576_v23 = vadd.f32 %v1558_v22, %v1166_v49  ;;  %v5466_v24 = vadd.f32 %v1730_v0, %v1562_v28 }
 0x181   : > { %v1734_v26 = vpop.f32.mrf.mxu0  ;;  %v1805_v27 = vpop.f32.mrf.mxu1 }
 0x182   : > { %v5468_v31 = vadd.f32 %v1734_v26, %v1569_v20  ;;  %v5470_v32 = vadd.f32 %v1805_v27, %v1563_v52 }
 0x183   : > { %v1736_v4 = vpop.f32.mrf.mxu0  ;;  %v1807_v6 = vpop.f32.mrf.mxu1 }
 0x184   : > { %v5472_v2 = vadd.f32 %v1736_v4, %v1570_v54  ;;  %v5474_v33 = vadd.f32 %v1807_v6, %v1564_v7 }
 0x185   : > { %v1811_v34 = vpop.f32.mrf.mxu1  ;;  %v1882_v35 = vpop.f32.mrf.mxu0 }
 0x186   : > { %v5476_v36 = vadd.f32 %v1811_v34, %v1571_v56  ;;  %v5478_v37 = vadd.f32 %v1882_v35, %v1565_v29 }
 0x187   : > { %v1813_v12 = vpop.f32.mrf.mxu1  ;;  %v1884_v38 = vpop.f32.mrf.mxu0 }
 0x188   : > { %v5480_v3 = vadd.f32 %v1813_v12, %v1572_v58  ;;  %v5482_v8 = vadd.f32 %v1884_v38, %v1566_v59 }
 0x189   : > { %v1888_v1 = vpop.f32.mrf.mxu0  ;;  %v1959_v39 = vpop.f32.mrf.mxu1 }
 0x18a   : > { %v5484_v40 = vadd.f32 %v1888_v1, %v1573_v62  ;;  %v5486_v41 = vadd.f32 %v1959_v39, %v1567_v63 }
 0x18b   : > { %v1890_v42 = vpop.f32.mrf.mxu0  ;;  %v1961_v43 = vpop.f32.mrf.mxu1 }
 0x18c   : > { %v5488_v18 = vadd.f32 %v1890_v42, %v1574_v14  ;;  %v5490_v44 = vadd.f32 %v1961_v43, %v1568_v15 }
 0x18d   : > { %v1965_v5 = vpop.f32.mrf.mxu1  ;;  %v2112_v45 = vpop.f32.mrf.mxu0 }
 0x18e   : > { %v5492_v13 = vadd.f32 %v1965_v5, %v1575_v19 }
 0x18f   : > { %v1967_v46 = vpop.f32.mrf.mxu1  ;;  %v2114_v47 = vpop.f32.mrf.mxu0 }
 0x190   : > { %v5494_v48 = vadd.f32 %v1967_v46, %v1576_v23 }
 0x191   : > { %v2118_v49 = vpop.f32.mrf.mxu0  ;;  %v2189_v28 = vpop.f32.mrf.mxu1 }
 0x193   : > { %v2120_v50 = vpop.f32.mrf.mxu0  ;;  %v2191_v51 = vpop.f32.mrf.mxu1 }
 0x195   : > { %v2195_v20 = vpop.f32.mrf.mxu1  ;;  %v2266_v52 = vpop.f32.mrf.mxu0 }
 0x197   : > { %v2197_v53 = vpop.f32.mrf.mxu1  ;;  %v2268_v25 = vpop.f32.mrf.mxu0 }
 0x199   : > { %v2272_v54 = vpop.f32.mrf.mxu0  ;;  %v2343_v7 = vpop.f32.mrf.mxu1 }
 0x19b   : > { %v2274_v30 = vpop.f32.mrf.mxu0  ;;  %v2345_v55 = vpop.f32.mrf.mxu1 }
 0x19d   : > { %v2349_v56 = vpop.f32.mrf.mxu1  ;;  %v2521_v29 = vpop.f32.mrf.mxu0 }
 0x19f   : > { %v2351_v11 = vpop.f32.mrf.mxu1  ;;  %v2523_v57 = vpop.f32.mrf.mxu0 }
 0x1a1   : > { %v2527_v58 = vpop.f32.mrf.mxu0  ;;  %v2598_v59 = vpop.f32.mrf.mxu1 }
 0x1a3   : > { %v2529_v60 = vpop.f32.mrf.mxu0  ;;  %v2600_v61 = vpop.f32.mrf.mxu1 }
 0x1a5   : > { %v2604_v62 = vpop.f32.mrf.mxu1  ;;  %v2675_v63 = vpop.f32.mrf.mxu0 }
 0x1a7   : > { %v2606_v9 = vpop.f32.mrf.mxu1  ;;  %v2677_v10 = vpop.f32.mrf.mxu0 }
 0x1a9   : > { %v2681_v14 = vpop.f32.mrf.mxu0  ;;  %v2752_v15 = vpop.f32.mrf.mxu1 }
 0x1ab   : > { %v2683_v16 = vpop.f32.mrf.mxu0  ;;  %v2754_v17 = vpop.f32.mrf.mxu1 }
 0x1ad   : > { %v2758_v19 = vpop.f32.mrf.mxu1  ;;  %v2930_v22 = vpop.f32.mrf.mxu0 }
 0x1af   : > { %v2760_v0 = vpop.f32.mrf.mxu1  ;;  %v2932_v23 = vpop.f32.mrf.mxu0 }
 0x1b1   : > { %v2936_v26 = vpop.f32.mrf.mxu0  ;;  %v5496_v27 = vpop.f32.mrf.mxu1 }
 0x1b2   : > { %5823 = vst [vmem:[#allocation2_spill] sm:$0xff] %v5496_v27 }
 0x1b3   : > { %v5498_v4 = vpop.f32.mrf.mxu0  ;;  %v5500_v6 = vpop.f32.mrf.mxu1 }
 0x1b4   : > { %5824 = vst [vmem:[#allocation3_spill] sm:$0xff] %v5498_v4  ;;  %5825 = vst [vmem:[#allocation4_spill] sm:$0xff] %v5500_v6 }
 0x1b5   : > { %v5502_v34 = vpop.f32.mrf.mxu1  ;;  %v5504_v35 = vpop.f32.mrf.mxu0 }
 0x1b6   : > { %5826 = vst [vmem:[#allocation5_spill] sm:$0xff] %v5502_v34  ;;  %5827 = vst [vmem:[#allocation6_spill] sm:$0xff] %v5504_v35 }
 0x1b7   : > { %v5506_v12 = vpop.f32.mrf.mxu1  ;;  %v5508_v38 = vpop.f32.mrf.mxu0 }
 0x1b8   : > { %5828 = vst [vmem:[#allocation7_spill] sm:$0xff] %v5506_v12  ;;  %5829 = vst [vmem:[#allocation8_spill] sm:$0xff] %v5508_v38 }
 0x1b9   : > { %v5510_v1 = vpop.f32.mrf.mxu0  ;;  %v5512_v39 = vpop.f32.mrf.mxu1 }
 0x1ba   : > { %5830 = vst [vmem:[#allocation9_spill] sm:$0xff] %v5510_v1  ;;  %5831 = vst [vmem:[#allocation10_spill] sm:$0xff] %v5512_v39  ;;  %v2354_v39 = vadd.f32 %v2112_v45, %v5464_v21  ;;  %v2363_v1 = vadd.f32 %v2120_v50, %v5472_v2  ;;  %v2365_v21 = vadd.f32 %v2197_v53, %v5480_v3 }
 0x1bb   : > { %v5514_v42 = vpop.f32.mrf.mxu0  ;;  %v5516_v43 = vpop.f32.mrf.mxu1  ;;  %v2367_v2 = vadd.f32 %v2274_v30, %v5488_v18 }
 0x1bc   : > { %5832 = vst [vmem:[#allocation11_spill] sm:$0xff] %v5514_v42  ;;  %5833 = vst [vmem:[#allocation12_spill] sm:$0xff] %v5516_v43  ;;  %v2355_v42 = vadd.f32 %v2114_v47, %v5466_v24  ;;  %v2362_v43 = vadd.f32 %v2118_v49, %v5468_v31  ;;  %v2359_v24 = vadd.f32 %v2268_v25, %v5482_v8 }
 0x1bd   : > { %v5518_v5 = vpop.f32.mrf.mxu1  ;;  %v3339_v46 = vpop.f32.mrf.mxu0  ;;  %v2366_v31 = vadd.f32 %v2272_v54, %v5484_v40  ;;  %v2763_v45 = vadd.f32 %v2521_v29, %v2354_v39  ;;  %v2369_v49 = vadd.f32 %v2351_v11, %v5494_v48  ;;  %v2774_v53 = vadd.f32 %v2606_v9, %v2365_v21  ;;  %v5842_v9 = vld [vmem:[#allocation5_spill] sm:$0xff] }
 0x1be   : > { %5834 = vst [vmem:[#allocation13_spill] sm:$0xff] %v5518_v5  ;;  %v2356_v5 = vadd.f32 %v2189_v28, %v5470_v32  ;;  %v2360_v32 = vadd.f32 %v2343_v7, %v5486_v41  ;;  %v2764_v28 = vadd.f32 %v2523_v57, %v2355_v42  ;;  %v2771_v50 = vadd.f32 %v2527_v58, %v2362_v43  ;;  %v5839_v58 = vld [vmem:[#allocation2_spill] sm:$0xff] }
 0x1bf   : > { %v5520_v6 = vpop.f32.mrf.mxu1  ;;  %v3341_v34 = vpop.f32.mrf.mxu0  ;;  %v2768_v18 = vadd.f32 %v2677_v10, %v2359_v24  ;;  %v2775_v25 = vadd.f32 %v2681_v14, %v2366_v31  ;;  %v2778_v48 = vadd.f32 %v2760_v0, %v2369_v49 }
 0x1c0   : > { %5835 = vst [vmem:[#allocation14_spill] sm:$0xff] %v5520_v6  ;;  %v2357_v6 = vadd.f32 %v2191_v51, %v5474_v33  ;;  %v2361_v33 = vadd.f32 %v2345_v55, %v5490_v44  ;;  %v2765_v3 = vadd.f32 %v2598_v59, %v2356_v5  ;;  %v2772_v51 = vadd.f32 %v2529_v60, %v2363_v1  ;;  %v5840_v60 = vld [vmem:[#allocation3_spill] sm:$0xff] }
 0x1c1   : > { %v5522_v4 = vpop.f32.mrf.mxu0  ;;  %v5524_v35 = vpop.f32.mrf.mxu1  ;;  %v3172_v44 = vadd.f32 %v2930_v22, %v2763_v45  ;;  %v2769_v54 = vadd.f32 %v2752_v15, %v2360_v32  ;;  %v3173_v29 = vadd.f32 %v2932_v23, %v2764_v28  ;;  %v3180_v11 = vadd.f32 %v2936_v26, %v2771_v50  ;;  %v5845_v23 = vld [vmem:[#allocation8_spill] sm:$0xff]  ;;  %v5847_v1 = vld [vmem:[#allocation10_spill] sm:$0xff] }
 0x1c2   : > { %5836 = vst [vmem:[#allocation15_spill] sm:$0xff] %v5522_v4  ;;  %5837 = vst [vmem:[#allocation16_spill] sm:$0xff] %v5524_v35  ;;  %v2364_v4 = vadd.f32 %v2195_v20, %v5476_v36  ;;  %v2358_v35 = vadd.f32 %v2266_v52, %v5478_v37  ;;  %v2368_v36 = vadd.f32 %v2349_v56, %v5492_v13 }
 0x1c3   : > { %v5526_v12 = vpop.f32.mrf.mxu0  ;;  %v5528_v38 = vpop.f32.mrf.mxu1  ;;  %v2766_v8 = vadd.f32 %v2600_v61, %v2357_v6  ;;  %v2776_v13 = vadd.f32 %v2683_v16, %v2367_v2  ;;  %v2770_v7 = vadd.f32 %v2754_v17, %v2361_v33  ;;  %v3581_v57 = vadd.f32 %v3339_v46, %v3172_v44  ;;  %v5843_v16 = vld [vmem:[#allocation6_spill] sm:$0xff]  ;;  %v5846_v6 = vld [vmem:[#allocation9_spill] sm:$0xff]  ;;  %v5848_v42 = vld [vmem:[#allocation11_spill] sm:$0xff] }
 0x1c4   : > { %5838 = vst [vmem:[#allocation17_spill] sm:$0xff] %v5526_v12  ;;  %v2773_v20 = vadd.f32 %v2604_v62, %v2364_v4  ;;  %v2767_v40 = vadd.f32 %v2675_v63, %v2358_v35  ;;  %v2777_v30 = vadd.f32 %v2758_v19, %v2368_v36  ;;  %v3174_v59 = vadd.f32 %v5839_v58, %v2765_v3  ;;  %v5841_v62 = vld [vmem:[#allocation4_spill] sm:$0xff]  ;;  %v5844_v19 = vld [vmem:[#allocation7_spill] sm:$0xff] }
 0x1c5   : > { %v5538_v27 = vpop.f32.mrf.mxu1  ;;  %v5540_v12 = vpop.f32.mrf.mxu0  ;;  %v3181_v61 = vadd.f32 %v5840_v60, %v2772_v51  ;;  %v3175_v63 = vadd.f32 %v5841_v62, %v2766_v8  ;;  %v3183_v22 = vadd.f32 %v5844_v19, %v2774_v53  ;;  %v3582_v4 = vadd.f32 %v3341_v34, %v3173_v29  ;;  %v5849_v21 = vld [vmem:[#allocation12_spill] sm:$0xff]  ;;  %v5852_v36 = vld [vmem:[#allocation13_spill] sm:$0xff] }
 0x1c6   : > { %v3182_v10 = vadd.f32 %v5842_v9, %v2773_v20  ;;  %v3176_v17 = vadd.f32 %v5843_v16, %v2767_v40  ;;  %v3177_v26 = vadd.f32 %v5845_v23, %v2768_v18  ;;  %v3184_v35 = vadd.f32 %v5846_v6, %v2775_v25 }
 0x1c7   : > { %v3424_v37 = vpop.f32.mrf.mxu1  ;;  %v3495_v47 = vpop.f32.mrf.mxu0  ;;  %v3178_v39 = vadd.f32 %v5847_v1, %v2769_v54  ;;  %v3185_v43 = vadd.f32 %v5848_v42, %v2776_v13  ;;  %v3179_v24 = vadd.f32 %v5849_v21, %v2770_v7  ;;  %v3186_v45 = vadd.f32 %v5852_v36, %v2777_v30  ;;  %v5853_v49 = vld [vmem:[#allocation14_spill] sm:$0xff] }
 0x1c8   : > { %v5575_v28 = vadd.f32 %v5853_v49, %v2778_v48  ;;  %v3584_v44 = vadd.f32 %v5528_v38, %v3175_v63  ;;  %v3591_v54 = vadd.f32 %v5538_v27, %v3182_v10  ;;  %v3585_v13 = vadd.f32 %v5540_v12, %v3176_v17 }
 0x1c9   : > { %v3499_v52 = vpop.f32.mrf.mxu0  ;;  %v3570_v41 = vpop.f32.mrf.mxu1  ;;  %v5850_v31 = vld [vmem:[#allocation15_spill] sm:$0xff]  ;;  %v5851_v2 = vld [vmem:[#allocation16_spill] sm:$0xff]  ;;  %v3592_v7 = vadd.f32 %v3424_v37, %v3183_v22  ;;  %v3586_v29 = vadd.f32 %v3495_v47, %v3177_v26 }
 0x1ca   : > { %v3589_v32 = vadd.f32 %v5850_v31, %v3180_v11  ;;  %v3583_v33 = vadd.f32 %v5851_v2, %v3174_v59  ;;  %v3593_v59 = vadd.f32 %v3499_v52, %v3184_v35  ;;  %v3587_v60 = vadd.f32 %v3570_v41, %v3178_v39 }
 0x1cb   : > { %v3501_v55 = vpop.f32.mrf.mxu0  ;;  %v5550_v56 = vpop.f32.mrf.mxu1  ;;  %v5854_v50 = vld [vmem:[#allocation17_spill] sm:$0xff] }
 0x1cc   : > { %v3590_v3 = vadd.f32 %v5854_v50, %v3181_v61  ;;  %v3594_v17 = vadd.f32 %v3501_v55, %v3185_v43  ;;  %v3588_v23 = vadd.f32 %v5550_v56, %v3179_v24 }
 0x1cd   : > { %v5556_v14 = vpop.f32.mrf.mxu1  ;;  %v3748_v15 = vpop.f32.mrf.mxu0 }
 0x1ce   : > { %v5560_v0 = vadd.f32 %v3748_v15, %v3581_v57 }
 0x1cf   : > { %v5566_v5 = vpop.f32.mrf.mxu1  ;;  %v3750_v46 = vpop.f32.mrf.mxu0 }
 0x1d0   : > { %v5571_v34 = vadd.f32 %v3750_v46, %v3582_v4  ;;  %v4026_v51 = vmul.f32 %v5560_v0, %v5560_v0 }
 0x1d1   : > { %v3754_v8 = vpop.f32.mrf.mxu0  ;;  %v3825_v20 = vpop.f32.mrf.mxu1 }
 0x1d2   : > { %v4008_v40 = vadd.f32 %v5571_v34, %v5560_v0  ;;  %v4027_v53 = vmul.f32 %v5571_v34, %v5571_v34  ;;  %v5584_v18 = vadd.f32 %v3754_v8, %v3589_v32  ;;  %v5586_v25 = vadd.f32 %v3825_v20, %v3583_v33 }
 0x1d3   : > { %v3756_v30 = vpop.f32.mrf.mxu0  ;;  %v3827_v48 = vpop.f32.mrf.mxu1  ;;  %v3595_v33 = vadd.f32 %v5556_v14, %v3186_v45 }
 0x1d4   : > { %v4042_v11 = vadd.f32 %v4027_v53, %v4026_v51  ;;  %v4009_v57 = vadd.f32 %v4008_v40, %v5586_v25  ;;  %v4028_v58 = vmul.f32 %v5586_v25, %v5586_v25  ;;  %v5594_v61 = vadd.f32 %v3756_v30, %v3590_v3 }
 0x1d5   : > { %v5596_v62 = vadd.f32 %v3827_v48, %v3584_v44  ;;  %v3831_v38 = vpop.f32.mrf.mxu1  ;;  %v3902_v27 = vpop.f32.mrf.mxu0  ;;  %v4034_v12 = vmul.f32 %v5584_v18, %v5584_v18  ;;  %v3596_v40 = vadd.f32 %v5566_v5, %v5575_v28 }
 0x1d6   : > { %v4043_v37 = vadd.f32 %v4042_v11, %v4028_v58  ;;  %v5600_v63 = vadd.f32 %v3831_v38, %v3591_v54  ;;  %v5602_v47 = vadd.f32 %v3902_v27, %v3585_v13  ;;  %v4017_v9 = vadd.f32 %v5594_v61, %v5584_v18 }
 0x1d7   : > { %v4035_v52 = vmul.f32 %v5594_v61, %v5594_v61  ;;  %v4010_v41 = vadd.f32 %v4009_v57, %v5596_v62  ;;  %v4029_v10 = vmul.f32 %v5596_v62, %v5596_v62  ;;  %v3833_v15 = vpop.f32.mrf.mxu1  ;;  %v3904_v16 = vpop.f32.mrf.mxu0 }
 0x1d8   : > { %v4036_v19 = vmul.f32 %v5600_v63, %v5600_v63  ;;  %v5613_v22 = vadd.f32 %v3833_v15, %v3592_v7  ;;  %v5615_v4 = vadd.f32 %v3904_v16, %v3586_v29  ;;  %v4018_v6 = vadd.f32 %v4017_v9, %v5600_v63  ;;  %v4074_v9 = vld [vmem:[%s5817_s4] sm:$0xff] }
 0x1d9   : > { %v4051_v26 = vadd.f32 %v4035_v52, %v4034_v12  ;;  %v4011_v35 = vadd.f32 %v4010_v41, %v5602_v47  ;;  %v3908_v1 = vpop.f32.mrf.mxu0  ;;  %v3979_v39 = vpop.f32.mrf.mxu1  ;;  %v4030_v42 = vmul.f32 %v5602_v47, %v5602_v47  ;;  %v4044_v21 = vadd.f32 %v4043_v37, %v4029_v10  ;;  %4641 = vmatprep.mubr.msk.f32.mxu0 %vm4076_vm9, %v4074_v9  ;;  %v5669_v52 = vld [vmem:[%s5816_s3 + $0x8] sm:$0xff]  ;;  %v5674_v41 = vld [vmem:[%s5816_s3] sm:$0xff] }
 0x1da   : > { %v4037_v55 = vmul.f32 %v5613_v22, %v5613_v22  ;;  %v5624_v43 = vadd.f32 %v3908_v1, %v3593_v59  ;;  %v5626_v46 = vadd.f32 %v3979_v39, %v3587_v60  ;;  %v4019_v56 = vadd.f32 %v4018_v6, %v5613_v22  ;;  %4648 = vmatprep.mubr.msk.f32.mxu1 %vm4076_vm9, %v4074_v9 }
 0x1db   : > { %v4052_v31 = vadd.f32 %v4051_v26, %v4036_v19  ;;  %v4012_v24 = vadd.f32 %v4011_v35, %v5615_v4  ;;  %v3910_v32 = vpop.f32.mrf.mxu0  ;;  %v3981_v2 = vpop.f32.mrf.mxu1  ;;  %v4031_v53 = vmul.f32 %v5615_v4, %v5615_v4  ;;  %v4045_v44 = vadd.f32 %v4044_v21, %v4030_v42  ;;  %v4075_v42 = vld [vmem:[%s5817_s4 + $0x8] sm:$0xff] }
 0x1dc   : > { %v4038_v36 = vmul.f32 %v5624_v43, %v5624_v43  ;;  %v5633_v49 = vadd.f32 %v3910_v32, %v3594_v17  ;;  %v5635_v50 = vadd.f32 %v3981_v2, %v3588_v23  ;;  %v4020_v51 = vadd.f32 %v4019_v56, %v5624_v43 }
 0x1dd   : > { %v4053_v3 = vadd.f32 %v4052_v31, %v4037_v55  ;;  %v3985_v8 = vpop.f32.mrf.mxu1  ;;  %v4013_v20 = vadd.f32 %v4012_v24, %v5626_v46  ;;  %v4032_v11 = vmul.f32 %v5626_v46, %v5626_v46  ;;  %v4046_v60 = vadd.f32 %v4045_v44, %v4031_v53 }
 0x1de   : > { %v4039_v14 = vmul.f32 %v5633_v49, %v5633_v49  ;;  %v5645_v45 = vadd.f32 %v3985_v8, %v3595_v33  ;;  %v4021_v13 = vadd.f32 %v4020_v51, %v5633_v49  ;;  %v4033_v27 = vmul.f32 %v5635_v50, %v5635_v50 }
 0x1df   : > { %v4054_v54 = vadd.f32 %v4053_v3, %v4038_v36  ;;  %v3987_v7 = vpop.f32.mrf.mxu1  ;;  %v4014_v30 = vadd.f32 %v4013_v20, %v5635_v50  ;;  %v4047_v12 = vadd.f32 %v4046_v60, %v4032_v11  ;;  %v4061_v10 = vmul.f32 1024.0, %v5669_v52 }
 0x1e0   : > { %v4040_v48 = vmul.f32 %v5645_v45, %v5645_v45  ;;  %v5651_v29 = vadd.f32 %v3987_v7, %v3596_v40  ;;  %v4022_v5 = vadd.f32 %v4021_v13, %v5645_v45  ;;  %v4060_v15 = vmul.f32 1024.0, %v5674_v41 }
 0x1e1   : > { %4015 = vadd.xlane.f32.xlu1 %v4014_v30  ;;  %v4055_v28 = vadd.f32 %v4054_v54, %v4039_v14  ;;  %v4048_v37 = vadd.f32 %v4047_v12, %v4033_v27  ;;  %v4065_v16 = vmul.f32 2.0, %v5669_v52  ;;  %v4064_v26 = vmul.f32 2.0, %v5674_v41  ;;  %v4244_v30 = vld [vmem:[%s362_s12 + $0x8] sm:$0xff] }
 0x1e2   : > { %v4023_v57 = vadd.f32 %v4022_v5, %v5651_v29  ;;  %v4041_v58 = vmul.f32 %v5651_v29, %v5651_v29  ;;  %v4071_v1 = vmul.f32 %v4061_v10, %v5669_v52  ;;  %v4070_v56 = vmul.f32 %v4060_v15, %v5674_v41  ;;  %v4243_v5 = vld [vmem:[%s362_s12] sm:$0xff] }
 0x1e3   : > { %v4056_v59 = vadd.f32 %v4055_v28, %v4040_v48  ;;  %v4756_v33 = vmov 0   ;;  %v4248_v48 = vld [vmem:[%s5818_s5 + $0x8] sm:$0xff]  ;;  %v4246_v28 = vadd.f32 1.0, %v4244_v30 }
 0x1e4   : > { %4024 = vadd.xlane.f32.xlu0 %v4023_v57  ;;  %4669 = vset.pattern.permute.xlu1 %v4756_v33  ;;  %v4247_v57 = vld [vmem:[%s5818_s5] sm:$0xff] }
 0x1e5   : > { %v4057_v38 = vadd.f32 %v4056_v59, %v4041_v58  ;;  %4670 = vset.pattern.permute.xlu0 %v4756_v33  ;;  %v4245_v59 = vadd.f32 1.0, %v4243_v5 }
 0x1e8   : > { %4058 = vadd.xlane.f32.xlu0 %v4057_v38  ;;  %v4257_v38 = vld [vmem:[%s5819_s6] sm:$0xff] }
 0x1ec   : > { %4049 = vadd.xlane.f32.xlu0 %v4048_v37  ;;  %v4258_v37 = vld [vmem:[%s5819_s6 + $0x8] sm:$0xff] }
 0x26a   : > { %v4016_v17 = vpop.xlane.xlu1 %4015 }
 0x26b   : > { %v4062_v6 = vadd.f32 %v4060_v15, %v4016_v17  ;;  %v4066_v21 = vmul.f32 %v4064_v26, %v4016_v17  ;;  %v4263_v26 = vld [vmem:[%s367_s23] sm:$0xff] }
 0x26d   : > { %v4025_v19 = vpop.xlane.xlu0 %4024 }
 0x26e   : > { %v4063_v23 = vadd.f32 %v4061_v10, %v4025_v19  ;;  %v4067_v35 = vmul.f32 %v4065_v16, %v4025_v19  ;;  %v4259_v16 = vmul.f32 %v4257_v38, %v4245_v59 }
 0x270   : > { %4637 = vmatprep.subr.mxu0 %v4063_v23 }
 0x271   : > { %4638 = vmatpush3.msra.mxu0 %v4063_v23  ;;  %v4059_v39 = vpop.xlane.xlu0 %4058  ;;  %v4260_v23 = vmul.f32 %v4258_v37, %v4246_v28 }
 0x272   : > { %v4069_v55 = vadd.f32 %v4067_v35, %v4059_v39  ;;  %4639 = vmatprep.subr.mxu0 %v4062_v6  ;;  %v4264_v39 = vld [vmem:[%s367_s23 + $0x8] sm:$0xff] }
 0x273   : > { %4640 = vmatpush3.msra.mxu0 %v4062_v6 }
 0x274   : > { %v4073_v31 = vadd.f32 %v4071_v1, %v4069_v55  ;;  %4642 = vmatmul.mubr.msk.f32.vlgmr.msra.gmra.mxu0 %vm4076_vm9, %v4075_v42 }
 0x275   : > { %v4050_v24 = vpop.xlane.xlu0 %4049 }
 0x276   : > { %v4068_v32 = vadd.f32 %v4066_v21, %v4050_v24  ;;  %4644 = vmatprep.subr.mxu1 %v4073_v31 }
 0x277   : > { %4645 = vmatpush3.msra.mxu1 %v4073_v31 }
 0x278   : > { %v4072_v2 = vadd.f32 %v4070_v56, %v4068_v32 }
 0x27a   : > { %4646 = vmatprep.subr.mxu1 %v4072_v2 }
 0x27b   : > { %4647 = vmatpush3.msra.mxu1 %v4072_v2 }
 0x27c   : > { %4649 = vmatmul.mubr.msk.f32.vlgmr.msra.gmra.mxu1 %vm4076_vm9, %v4075_v42 }
 0x334   : > { %v4643_v36 = vpop.f32.mrf.mxu0 }
 0x335   : > { %v4234_v3 = vmul.f32 %v4643_v36, %v4643_v36  ;;  %v4254_v9 = vsub.f32 %v5669_v52, %v4643_v36 }
 0x336   : > { %v4149_v51 = vpop.f32.mrf.mxu0 }
 0x337   : > { %v4233_v20 = vmul.f32 %v4149_v51, %v4149_v51  ;;  %v4253_v10 = vsub.f32 %v5674_v41, %v4149_v51 }
 0x33c   : > { %v4650_v8 = vpop.f32.mrf.mxu1 }
 0x33d   : > { %v4236_v40 = vsub.f32 %v4650_v8, %v4234_v3 }
 0x33e   : > { %v4224_v53 = vpop.f32.mrf.mxu1 }
 0x33f   : > { %v4238_v14 = vmax.f32 %v4236_v40, 0.0  ;;  %v4235_v44 = vsub.f32 %v4224_v53, %v4233_v20 }
 0x341   : > { %v4240_v54 = vadd.f32 1e-05, %v4238_v14  ;;  %v4237_v13 = vmax.f32 %v4235_v44, 0.0 }
 0x343   : > { %4671 = vrsqrt.f32 %v4240_v54  ;;  %v4239_v7 = vadd.f32 1e-05, %v4237_v13 }
 0x345   : > { %4673 = vrsqrt.f32 %v4239_v7 }
 0x350   : > { %v4672_v11 = vpop.eup %4671 }
 0x351   : > { %v4250_v58 = vmul.f32 %v4672_v11, %v4248_v48 }
 0x352   : > { %v4674_v60 = vpop.eup %4673 }
 0x353   : > { %v4252_v27 = vmul.f32 %v4250_v58, %v4246_v28  ;;  %v4249_v12 = vmul.f32 %v4674_v60, %v4247_v57 }
 0x355   : > { %4274 = vperm.xlu0 %4670, %v4252_v27   ;;  %v4251_v15 = vmul.f32 %v4249_v12, %v4245_v59  ;;  %v4256_v17 = vmul.f32 %v4254_v9, %v4252_v27 }
 0x357   : > { %4269 = vperm.xlu1 %4669, %v4251_v15   ;;  %v4255_v19 = vmul.f32 %v4253_v10, %v4251_v15  ;;  %v4262_v1 = vadd.f32 %v4260_v23, %v4256_v17 }
 0x359   : > { %v4261_v6 = vadd.f32 %v4259_v16, %v4255_v19  ;;  %v4266_v52 = vadd.f32 %v4264_v39, %v4262_v1 }
 0x35b   : > { %v4265_v35 = vadd.f32 %v4263_v26, %v4261_v6 }
 0x35d   : > { %4295 = vperm.xlu1 %4669, %v4265_v35  }
 0x361   : > { %4300 = vperm.xlu1 %4669, %v4266_v52  }
 0x3d0   : > { %v4275_v41 = vpop.permute.xlu0 %4274 }
 0x3d1   : > { %v4285_v55 = vmul.f32 %v4275_v41, %v5584_v18  ;;  %v4286_v21 = vmul.f32 %v4275_v41, %v5594_v61  ;;  %v4287_v31 = vmul.f32 %v4275_v41, %v5600_v63  ;;  %v4288_v56 = vmul.f32 %v4275_v41, %v5613_v22 }
 0x3d2   : > { %v4270_v42 = vpop.permute.xlu1 %4269  ;;  %v4289_v24 = vmul.f32 %v4275_v41, %v5624_v43  ;;  %v4290_v32 = vmul.f32 %v4275_v41, %v5633_v49  ;;  %v4291_v2 = vmul.f32 %v4275_v41, %v5645_v45  ;;  %v4292_v33 = vmul.f32 %v4275_v41, %v5651_v29 }
 0x3d3   : > { %v4277_v36 = vmul.f32 %v4270_v42, %v5560_v0  ;;  %v4278_v3 = vmul.f32 %v4270_v42, %v5571_v34  ;;  %v4279_v18 = vmul.f32 %v4270_v42, %v5586_v25  ;;  %v4280_v61 = vmul.f32 %v4270_v42, %v5596_v62 }
 0x3d4   : > { %v4281_v63 = vmul.f32 %v4270_v42, %v5602_v47  ;;  %v4282_v22 = vmul.f32 %v4270_v42, %v5615_v4  ;;  %v4283_v43 = vmul.f32 %v4270_v42, %v5626_v46  ;;  %v4284_v49 = vmul.f32 %v4270_v42, %v5635_v50 }
 0x3d8   : > { %v4296_v51 = vpop.permute.xlu1 %4295 }
 0x3d9   : > { %v5724_v45 = vadd.f32 %v4296_v51, %v4277_v36  ;;  %v5726_v29 = vadd.f32 %v4296_v51, %v4278_v3  ;;  %v5728_v0 = vadd.f32 %v4296_v51, %v4279_v18  ;;  %v5730_v34 = vadd.f32 %v4296_v51, %v4280_v61 }
 0x3da   : > { %v5732_v25 = vadd.f32 %v4296_v51, %v4281_v63  ;;  %v5734_v62 = vadd.f32 %v4296_v51, %v4282_v22  ;;  %v5736_v47 = vadd.f32 %v4296_v51, %v4283_v43  ;;  %v5738_v4 = vadd.f32 %v4296_v51, %v4284_v49 }
 0x3db   : > { %v4319_v46 = vsub.f32 0.0, %v5724_v45  ;;  %v4320_v50 = vsub.f32 0.0, %v5726_v29  ;;  %v4321_v8 = vsub.f32 0.0, %v5728_v0  ;;  %v4322_v20 = vsub.f32 0.0, %v5730_v34 }
 0x3dc   : > { %v4323_v40 = vsub.f32 0.0, %v5732_v25  ;;  %v4324_v53 = vsub.f32 0.0, %v5734_v62  ;;  %v4325_v14 = vsub.f32 0.0, %v5736_v47  ;;  %v4326_v44 = vsub.f32 0.0, %v5738_v4  ;;  %v4301_v54 = vpop.permute.xlu1 %4300 }
 0x3dd   : > { %v4335_v13 = vmul.f32 1.442695, %v4319_v46  ;;  %v4337_v7 = vmul.f32 1.442695, %v4320_v50  ;;  %v4339_v30 = vmul.f32 1.442695, %v4321_v8  ;;  %v5748_v48 = vadd.f32 %v4301_v54, %v4285_v55 }
 0x3de   : > { %v4341_v5 = vmul.f32 1.442695, %v4322_v20  ;;  %v4343_v28 = vmul.f32 1.442695, %v4323_v40  ;;  %v4345_v11 = vmul.f32 1.442695, %v4324_v53  ;;  %v5750_v57 = vadd.f32 %v4301_v54, %v4286_v21 }
 0x3df   : > { %4675 = vpow2.f32 %v4335_v13  ;;  %v4347_v58 = vmul.f32 1.442695, %v4325_v14  ;;  %v4349_v59 = vmul.f32 1.442695, %v4326_v44  ;;  %v5752_v60 = vadd.f32 %v4301_v54, %v4287_v31 }
 0x3e0   : > { %4677 = vpow2.f32 %v4337_v7  ;;  %v5754_v38 = vadd.f32 %v4301_v54, %v4288_v56  ;;  %v5756_v27 = vadd.f32 %v4301_v54, %v4289_v24  ;;  %v5758_v12 = vadd.f32 %v4301_v54, %v4290_v32 }
 0x3e1   : > { %4679 = vpow2.f32 %v4339_v30  ;;  %v5760_v37 = vadd.f32 %v4301_v54, %v4291_v2  ;;  %v5762_v9 = vadd.f32 %v4301_v54, %v4292_v33  ;;  %v4327_v10 = vsub.f32 0.0, %v5748_v48 }
 0x3e2   : > { %4681 = vpow2.f32 %v4341_v5  ;;  %v4328_v15 = vsub.f32 0.0, %v5750_v57  ;;  %v4329_v16 = vsub.f32 0.0, %v5752_v60  ;;  %v4330_v17 = vsub.f32 0.0, %v5754_v38 }
 0x3e3   : > { %4683 = vpow2.f32 %v4343_v28  ;;  %v4331_v19 = vsub.f32 0.0, %v5756_v27  ;;  %v4332_v23 = vsub.f32 0.0, %v5758_v12  ;;  %v4351_v26 = vmul.f32 1.442695, %v4327_v10 }
 0x3e4   : > { %4685 = vpow2.f32 %v4345_v11  ;;  %v4353_v6 = vmul.f32 1.442695, %v4328_v15  ;;  %v4333_v35 = vsub.f32 0.0, %v5760_v37  ;;  %v4355_v1 = vmul.f32 1.442695, %v4329_v16 }
 0x3e5   : > { %4687 = vpow2.f32 %v4347_v58  ;;  %v4334_v39 = vsub.f32 0.0, %v5762_v9  ;;  %v4357_v52 = vmul.f32 1.442695, %v4330_v17  ;;  %v4359_v41 = vmul.f32 1.442695, %v4331_v19 }
 0x3e6   : > { %4689 = vpow2.f32 %v4349_v59  ;;  %v4361_v42 = vmul.f32 1.442695, %v4332_v23  ;;  %v4363_v55 = vmul.f32 1.442695, %v4333_v35 }
 0x3e7   : > { %4691 = vpow2.f32 %v4351_v26  ;;  %v4365_v21 = vmul.f32 1.442695, %v4334_v39 }
 0x3e8   : > { %4693 = vpow2.f32 %v4353_v6 }
 0x3e9   : > { %4695 = vpow2.f32 %v4355_v1 }
 0x3ea   : > { %4697 = vpow2.f32 %v4357_v52 }
 0x3eb   : > { %4699 = vpow2.f32 %v4359_v41 }
 0x3ec   : > { %v4676_v31 = vpop.eup %4675  ;;  %4701 = vpow2.f32 %v4361_v42 }
 0x3ed   : > { %v4678_v56 = vpop.eup %4677  ;;  %v4367_v24 = vadd.f32 1.0, %v4676_v31  ;;  %4703 = vpow2.f32 %v4363_v55 }
 0x3ee   : > { %v4680_v32 = vpop.eup %4679  ;;  %v4368_v2 = vadd.f32 1.0, %v4678_v56  ;;  %4705 = vpow2.f32 %v4365_v21 }
 0x3ef   : > { %v4682_v33 = vpop.eup %4681  ;;  %v4369_v36 = vadd.f32 1.0, %v4680_v32  ;;  %4707 = vrcp.f32 %v4367_v24 }
 0x3f0   : > { %v4684_v3 = vpop.eup %4683  ;;  %v4370_v18 = vadd.f32 1.0, %v4682_v33  ;;  %4709 = vrcp.f32 %v4368_v2 }
 0x3f1   : > { %v4686_v61 = vpop.eup %4685  ;;  %v4371_v63 = vadd.f32 1.0, %v4684_v3  ;;  %4711 = vrcp.f32 %v4369_v36 }
 0x3f2   : > { %v4688_v22 = vpop.eup %4687  ;;  %v4372_v43 = vadd.f32 1.0, %v4686_v61  ;;  %4713 = vrcp.f32 %v4370_v18 }
 0x3f3   : > { %v4690_v49 = vpop.eup %4689  ;;  %v4373_v51 = vadd.f32 1.0, %v4688_v22  ;;  %4715 = vrcp.f32 %v4371_v63 }
 0x3f4   : > { %v4692_v46 = vpop.eup %4691  ;;  %v4374_v50 = vadd.f32 1.0, %v4690_v49  ;;  %4717 = vrcp.f32 %v4372_v43 }
 0x3f5   : > { %v4694_v8 = vpop.eup %4693  ;;  %4719 = vrcp.f32 %v4373_v51  ;;  %v4375_v20 = vadd.f32 1.0, %v4692_v46 }
 0x3f6   : > { %v4696_v40 = vpop.eup %4695  ;;  %4721 = vrcp.f32 %v4374_v50  ;;  %v4376_v53 = vadd.f32 1.0, %v4694_v8 }
 0x3f7   : > { %v4698_v14 = vpop.eup %4697  ;;  %v4377_v44 = vadd.f32 1.0, %v4696_v40  ;;  %4723 = vrcp.f32 %v4375_v20 }
 0x3f8   : > { %v4700_v54 = vpop.eup %4699  ;;  %v4378_v13 = vadd.f32 1.0, %v4698_v14  ;;  %4725 = vrcp.f32 %v4376_v53 }
 0x3f9   : > { %v4702_v7 = vpop.eup %4701  ;;  %v4379_v30 = vadd.f32 1.0, %v4700_v54  ;;  %4727 = vrcp.f32 %v4377_v44 }
 0x3fa   : > { %v4704_v5 = vpop.eup %4703  ;;  %v4380_v28 = vadd.f32 1.0, %v4702_v7  ;;  %4729 = vrcp.f32 %v4378_v13 }
 0x3fb   : > { %v4706_v11 = vpop.eup %4705  ;;  %v4381_v58 = vadd.f32 1.0, %v4704_v5  ;;  %4731 = vrcp.f32 %v4379_v30 }
 0x3fc   : > { %v4708_v59 = vpop.eup %4707  ;;  %v4382_v10 = vadd.f32 1.0, %v4706_v11  ;;  %4733 = vrcp.f32 %v4380_v28 }
 0x3fd   : > { %v4710_v15 = vpop.eup %4709  ;;  %v4399_v16 = vmul.f32 %v4708_v59, %v5724_v45  ;;  %4735 = vrcp.f32 %v4381_v58 }
 0x3fe   : > { %v4712_v17 = vpop.eup %4711  ;;  %v4400_v19 = vmul.f32 %v4710_v15, %v5726_v29  ;;  %4737 = vrcp.f32 %v4382_v10 }
 0x3ff   : > { %v4714_v23 = vpop.eup %4713  ;;  %v4401_v26 = vmul.f32 %v4712_v17, %v5728_v0  ;;  %4415 = vst [vmem:[%s5776_s27] sm:$0xff] %v4399_v16 }
 0x400   : > { %v4716_v6 = vpop.eup %4715  ;;  %v4402_v35 = vmul.f32 %v4714_v23, %v5730_v34  ;;  %4416 = vst [vmem:[%s5776_s27 + $0x8] sm:$0xff] %v4400_v19 }
 0x401   : > { %v4718_v1 = vpop.eup %4717  ;;  %v4403_v45 = vmul.f32 %v4716_v6, %v5732_v25  ;;  %4417 = vst [vmem:[%s5776_s27 + $0x10] sm:$0xff] %v4401_v26 }
 0x402   : > { %v4720_v39 = vpop.eup %4719  ;;  %v4404_v29 = vmul.f32 %v4718_v1, %v5734_v62  ;;  %4418 = vst [vmem:[%s5776_s27 + $0x18] sm:$0xff] %v4402_v35 }
 0x403   : > { %v4722_v52 = vpop.eup %4721  ;;  %v4405_v0 = vmul.f32 %v4720_v39, %v5736_v47  ;;  %4419 = vst [vmem:[%s5776_s27 + $0x20] sm:$0xff] %v4403_v45 }
 0x404   : > { %v4724_v41 = vpop.eup %4723  ;;  %v4406_v42 = vmul.f32 %v4722_v52, %v5738_v4  ;;  %4420 = vst [vmem:[%s5776_s27 + $0x28] sm:$0xff] %v4404_v29 }
 0x405   : > { %v4726_v34 = vpop.eup %4725  ;;  %4421 = vst [vmem:[%s5776_s27 + $0x30] sm:$0xff] %v4405_v0  ;;  %v4407_v25 = vmul.f32 %v4724_v41, %v5748_v48 }
 0x406   : > { %v4728_v55 = vpop.eup %4727  ;;  %4422 = vst [vmem:[%s5776_s27 + $0x38] sm:$0xff] %v4406_v42  ;;  %v4408_v62 = vmul.f32 %v4726_v34, %v5750_v57 }
 0x407   : > { %v4730_v21 = vpop.eup %4729  ;;  %v4409_v47 = vmul.f32 %v4728_v55, %v5752_v60  ;;  %4423 = vst [vmem:[%s5776_s27 + $0x40] sm:$0xff] %v4407_v25 }
 0x408   : > { %v4732_v4 = vpop.eup %4731  ;;  %v4410_v31 = vmul.f32 %v4730_v21, %v5754_v38  ;;  %4424 = vst [vmem:[%s5776_s27 + $0x48] sm:$0xff] %v4408_v62 }
 0x409   : > { %v4734_v56 = vpop.eup %4733  ;;  %v4411_v24 = vmul.f32 %v4732_v4, %v5756_v27  ;;  %4425 = vst [vmem:[%s5776_s27 + $0x50] sm:$0xff] %v4409_v47 }
 0x40a   : > { %v4736_v48 = vpop.eup %4735  ;;  %v4412_v32 = vmul.f32 %v4734_v56, %v5758_v12  ;;  %4426 = vst [vmem:[%s5776_s27 + $0x58] sm:$0xff] %v4410_v31 }
 0x40b   : > { %v4738_v57 = vpop.eup %4737  ;;  %v4413_v2 = vmul.f32 %v4736_v48, %v5760_v37  ;;  %4427 = vst [vmem:[%s5776_s27 + $0x60] sm:$0xff] %v4411_v24 }
 0x40c   : > { %v4414_v60 = vmul.f32 %v4738_v57, %v5762_v9  ;;  %4428 = vst [vmem:[%s5776_s27 + $0x68] sm:$0xff] %v4412_v32 }
 0x40d   : > { %4429 = vst [vmem:[%s5776_s27 + $0x70] sm:$0xff] %v4413_v2 }
 0x40e   : > { %4430 = vst [vmem:[%s5776_s27 + $0x78] sm:$0xff] %v4414_v60 }
 0x40f PF: > { %s19_s30 = sadd.s32 1, %s4745_s30  }
 0x410   : > { %p16_p4 = scmp.ge.s32.totalorder %s19_s30, 4  }
 0x412   :  { %18 = sbr.rel (!%p16_p4) target bundleno = 1 (0x1), region = 108 }

</bundles_post_ra>
